<compile_context>
chip_gen: v7x
topology: tpu7x:2x2x1
jax: 0.10.0
libtpu: 0.0.40
codegen_flags: <defaults>
</compile_context>

<pallas_src>
import functools

import jax
import jax.numpy as jnp
import numpy as np
from jax.experimental import pallas as pl
from jax.experimental.pallas import tpu as pltpu

BN_EPS = 1e-5
C_PAD = 8                 # sublane-aligned channel padding for all activations
K_IM2COL = 9 * C_PAD      # 72: im2col contraction depth for both 3x3 convs


def _basic_block_kernel(x_ref, w_ref, bn_ref, out_ref, *, N, H, W, C_out, eps):
    """Fused conv1+bn1+relu, conv_sc+bn_sc (shared matmul), conv2+bn2+add+relu.

    In-kernel layouts (all float32, channels zero-padded to C_PAD=8 sublanes):
      x_ref   : (C_PAD, N*H*W)        channel-major input
      w_ref   : (3*C_PAD, 9*C_PAD)    rows 0..5  = conv1 im2col weights,
                                      rows 8..15 = 1x1 shortcut (center tap),
                                      rows 16..23 = conv2 im2col weights
      bn_ref  : (C_PAD, 6)            columns [g1, b1, g2, b2, g_sc, b_sc]
      out_ref : (N*C_out, H*W)        rows ordered (n, c) -> free reshape to NCHW
    """
    HW = H * W
    NHW = N * HW
    log2_w = W.bit_length() - 1          # W is a power of two

    xr = x_ref[...]                      # (C_PAD, NHW)

    # ---- halo masks: integer iota + bitwise ops, computed once, reused by
    # ---- both 3x3 convs (pure loop-invariant VPU work).
    p = jax.lax.broadcasted_iota(jnp.int32, (C_PAD, NHW), 1)
    w_idx = p & (W - 1)                  # p mod W
    h_idx = (p >> log2_w) & (H - 1)      # (p // W) mod H
    m_top = h_idx >= 1                   # dh = -1 stays inside the image
    m_bot = h_idx <= H - 2               # dh = +1
    m_lft = w_idx >= 1                   # dw = -1
    m_rgt = w_idx <= W - 2               # dw = +1

    def _mask(dh, dw):
        conds = []
        if dh == -1:
            conds.append(m_top)
        elif dh == 1:
            conds.append(m_bot)
        if dw == -1:
            conds.append(m_lft)
        elif dw == 1:
            conds.append(m_rgt)
        m = conds[0]
        for c in conds[1:]:
            m = jnp.logical_and(m, c)
        return m.astype(jnp.float32)

    masks = {(dh, dw): (None if (dh == 0 and dw == 0) else _mask(dh, dw))
             for dh in (-1, 0, 1) for dw in (-1, 0, 1)}

    def tap(v, dh, dw):
        """tap[:, p] = v[:, p + dh*W + dw], zeroed where the tap leaves the image.
        Valid for stride=1, 3x3 (|dh|,|dw| <= 1) with images contiguous on lanes;
        the mask also covers the circular wrap of the rotate."""
        delta = dh * W + dw
        if delta == 0:
            return v
        s = pltpu.roll(v, shift=(-delta) % NHW, axis=1)   # XLU lane rotate
        return s * masks[(dh, dw)]

    def im2col(v):
        # 9 taps x C_PAD rows -> (72, NHW); every chunk is 8-sublane aligned.
        return jnp.concatenate(
            [tap(v, dh, dw) for dh in (-1, 0, 1) for dw in (-1, 0, 1)], axis=0)

    def mxu(lhs, rhs):
        return jnp.dot(lhs, rhs, preferred_element_type=jnp.float32,
                       precision=jax.lax.Precision.HIGHEST)

    def bn(y, g, b, *, relu, extra=None):
        """Training-mode BatchNorm2d, single pass (biased variance, clamped)."""
        inv_cnt = 1.0 / float(NHW)
        mean = jnp.sum(y, axis=1, keepdims=True) * inv_cnt
        var = jnp.maximum(
            jnp.sum(y * y, axis=1, keepdims=True) * inv_cnt - mean * mean, 0.0)
        scale = g * jax.lax.rsqrt(var + eps)
        o = y * scale + (b - mean * scale)
        if extra is not None:
            o = o + extra
        if relu:
            o = jnp.maximum(o, 0.0)
        return o

    g1, b1 = bn_ref[:, 0:1], bn_ref[:, 1:2]     # zero-padded past C_mid
    g2, b2 = bn_ref[:, 2:3], bn_ref[:, 3:4]
    gsc, bsc = bn_ref[:, 4:5], bn_ref[:, 5:6]

    # conv1 (3x3, C_in->C_mid) and the 1x1 shortcut share ONE im2col matmul:
    # stacked LHS (16, 72) x col1 (72, NHW) -> (16, NHW); split rows.
    col1 = im2col(xr)
    y1 = mxu(w_ref[0:2 * C_PAD, :], col1)
    h = bn(y1[0:C_PAD, :], g1, b1, relu=True)               # padded rows stay 0
    sc = bn(y1[C_PAD:2 * C_PAD, :], gsc, bsc, relu=False)

    # conv2 (3x3, C_mid->C_out) + bn2 + residual add + relu
    y2 = mxu(w_ref[2 * C_PAD:3 * C_PAD, :], im2col(h))
    out = bn(y2, g2, b2, relu=True, extra=sc)

    # (C_out, N*HW) -> rows ordered (n, c): 8-aligned sublanes, 128-aligned
    # lane slices -> full unmasked stores.
    for n in range(N):
        out_ref[n * C_out:(n + 1) * C_out, :] = out[:, n * HW:(n + 1) * HW]


def _fold3x3(w, cin_pad):
    """PyTorch (Cout, Cin, 3, 3) -> (Cout, 9*cin_pad), tap-major then (padded) cin,
    matching the kernel's im2col row order."""
    w = jnp.asarray(w, jnp.float32)
    cout, cin = w.shape[:2]
    wt = jnp.transpose(w, (0, 2, 3, 1))                               # (cout,3,3,cin)
    wt = jnp.pad(wt, ((0, 0), (0, 0), (0, 0), (0, cin_pad - cin)))
    return wt.reshape(cout, 9 * cin_pad)


def prepare_params(p):
    """One-time conversion of PyTorch-layout parameters to 2 packed slabs."""
    w1 = jnp.asarray(p["w1"], jnp.float32)
    w2 = jnp.asarray(p["w2"], jnp.float32)
    wsc = jnp.asarray(p["w_sc"], jnp.float32)
    c_mid, c_in = w1.shape[:2]
    c_out = w2.shape[0]
    assert c_in <= C_PAD and c_mid <= C_PAD and c_out == C_PAD

    # LHS1 (16, 72): conv1 in rows 0..c_mid-1; 1x1 shortcut in rows 8..15,
    # placed in the center-tap (dh=dw=0, tap index 4) column block.
    lhs1 = jnp.zeros((2 * C_PAD, K_IM2COL), jnp.float32)
    lhs1 = lhs1.at[:c_mid, :].set(_fold3x3(w1, C_PAD))
    lhs1 = lhs1.at[C_PAD:C_PAD + c_out,
                   4 * C_PAD:4 * C_PAD + c_in].set(wsc.reshape(c_out, c_in))
    # LHS2 (8, 72): conv2.
    lhs2 = jnp.zeros((C_PAD, K_IM2COL), jnp.float32)
    lhs2 = lhs2.at[:c_out, :].set(_fold3x3(w2, C_PAD))
    w_slab = jnp.concatenate([lhs1, lhs2], axis=0)                    # (24, 72)

    def colp(v):
        v = jnp.asarray(v, jnp.float32).reshape(-1)
        return jnp.pad(v, (0, C_PAD - v.shape[0]))

    bn_slab = jnp.stack([colp(p["g1"]), colp(p["b1"]),
                         colp(p["g2"]), colp(p["b2"]),
                         colp(p["g_sc"]), colp(p["b_sc"])], axis=1)   # (8, 6)
    return dict(w_slab=w_slab, bn_slab=bn_slab)


@jax.jit
def basic_block_forward(x_nchw, kp):
    """BasicBlock(in_planes, planes, stride=1, mask1, mask2=None).forward, NCHW."""
    N, C_in, H, W = x_nchw.shape
    assert (H & (H - 1)) == 0 and (W & (W - 1)) == 0, "halo masks need pow2 H, W"
    HW = H * W
    w_slab, bn_slab = kp["w_slab"], kp["bn_slab"]
    C_out = w_slab.shape[0] - 2 * C_PAD

    # Channel-major + pad to 8 sublanes: pure layout plumbing in the wrapper so
    # every in-kernel slice/concat is (8,128)-aligned.
    x_cm = jnp.transpose(x_nchw.astype(jnp.float32),
                         (1, 0, 2, 3)).reshape(C_in, N * HW)
    x_cm = jnp.pad(x_cm, ((0, C_PAD - C_in), (0, 0)))

    kernel = functools.partial(_basic_block_kernel, N=N, H=H, W=W,
                               C_out=C_out, eps=BN_EPS)

    inputs = (x_cm, w_slab, bn_slab)
    out2d = pl.pallas_call(
        kernel,
        out_shape=jax.ShapeDtypeStruct((N * C_out, HW), jnp.float32),
        grid=(1,),
        in_specs=[pl.BlockSpec(a.shape, lambda i: (0, 0)) for a in inputs],
        out_specs=pl.BlockSpec((N * C_out, HW), lambda i: (0, 0)),
        compiler_params=pltpu.CompilerParams(
            dimension_semantics=("arbitrary",)),
        # TODO(synk): at production sizes add a "parallel" grid axis over lane
        # (batch*spatial) tiles with a two-pass BN, and re-derive the lane tile
        # + vmem_limit_bytes for v7x's 64 MiB VMEM (im2col is 9x the activation
        # footprint); at this size a single VMEM-resident block is optimal.
    )(*inputs)

    return out2d.reshape(N, C_out, H, W)   # free row-major reshape back to NCHW


def init_params(key, in_planes, planes, mask1):
    """Random parameters in PyTorch layouts (conv weights OIHW, BN affine per-channel)."""
    ks = jax.random.split(key, 9)

    def conv_w(k, cout, cin, ksz):
        return 0.1 * jax.random.normal(k, (cout, cin, ksz, ksz), jnp.float32)

    return dict(
        w1=conv_w(ks[0], mask1, in_planes, 3),       # conv1: in_planes -> mask1
        g1=1.0 + 0.1 * jax.random.normal(ks[1], (mask1,), jnp.float32),
        b1=0.1 * jax.random.normal(ks[2], (mask1,), jnp.float32),
        w2=conv_w(ks[3], planes, mask1, 3),          # conv2: mask1 -> planes
        g2=1.0 + 0.1 * jax.random.normal(ks[4], (planes,), jnp.float32),
        b2=0.1 * jax.random.normal(ks[5], (planes,), jnp.float32),
        w_sc=conv_w(ks[6], planes, in_planes, 1),    # shortcut 1x1 conv
        g_sc=1.0 + 0.1 * jax.random.normal(ks[7], (planes,), jnp.float32),
        b_sc=0.1 * jax.random.normal(ks[8], (planes,), jnp.float32),
        # NOTE: self.mask1 (Mask) / self.ms1 are constructed in __init__ but are
        # never used in forward when mask2 is None -> no compute here.
    )


def reference_forward(x, p):
    """Plain-XLA reference (lax.conv + training-mode BN), PyTorch-layout params."""
    def bn(y, g, b):
        mean = jnp.mean(y, axis=(0, 2, 3), keepdims=True)
        var = jnp.mean((y - mean) ** 2, axis=(0, 2, 3), keepdims=True)
        return ((y - mean) * jax.lax.rsqrt(var + BN_EPS)
                * g[None, :, None, None] + b[None, :, None, None])

    def conv(v, w):
        pad = (w.shape[-1] - 1) // 2
        return jax.lax.conv_general_dilated(
            v, w, window_strides=(1, 1), padding=[(pad, pad), (pad, pad)],
            dimension_numbers=("NCHW", "OIHW", "NCHW"),
            precision=jax.lax.Precision.HIGHEST)

    h = jax.nn.relu(bn(conv(x, p["w1"]), p["g1"], p["b1"]))
    sc = bn(conv(x, p["w_sc"]), p["g_sc"], p["b_sc"])
    return jax.nn.relu(bn(conv(h, p["w2"]), p["g2"], p["b2"]) + sc)


if __name__ == "__main__":
    in_planes, planes, mask1 = 4, 8, 6
    N, H, W = 2, 16, 16

    key = jax.random.PRNGKey(0)
    kx, kparam = jax.random.split(key)
    x = jax.random.normal(kx, (N, in_planes, H, W), jnp.float32)
    params = init_params(kparam, in_planes, planes, mask1)
    kparams = prepare_params(params)

    out = basic_block_forward(x, kparams)
    jax.block_until_ready(out)

    assert out.shape == (N, planes, H, W), out.shape
    assert out.dtype == jnp.float32
    assert bool(jnp.all(out >= 0.0))          # final ReLU

    # Numerical check vs. a plain-XLA reference; both sides use f32 (HIGHEST)
    # matmul precision, so the tolerance is tight.
    ref = reference_forward(x, params)
    np.testing.assert_allclose(np.asarray(out), np.asarray(ref),
                               rtol=2e-3, atol=2e-3)

    print("KERNEL_OK")
</pallas_src>

<mosaic_0001>
module attributes {stable_mosaic.version = 11 : i64} {
  func.func @_basic_block_kernel(%arg0: i32, %arg1: memref<8x512xf32, #tpu.memory_space<vmem>>, %arg2: memref<24x72xf32, #tpu.memory_space<vmem>>, %arg3: memref<8x6xf32, #tpu.memory_space<vmem>>, %arg4: memref<16x256xf32, #tpu.memory_space<vmem>>) attributes {dimension_semantics = [#tpu.dimension_semantics<arbitrary>], iteration_bounds = array<i64: 1>, scalar_prefetch = 0 : i64, scratch_operands = 0 : i64, tpu.core_type = #tpu.core_type<tc>, window_params = [{pipeline_mode = #tpu.pipeline_mode<synchronous>, transform_indices = @transform_0, window_bounds = array<i64: 8, 512>}, {pipeline_mode = #tpu.pipeline_mode<synchronous>, transform_indices = @transform_1, window_bounds = array<i64: 24, 72>}, {pipeline_mode = #tpu.pipeline_mode<synchronous>, transform_indices = @transform_2, window_bounds = array<i64: 8, 6>}, {pipeline_mode = #tpu.pipeline_mode<synchronous>, transform_indices = @transform_3, window_bounds = array<i64: 16, 256>}]} {
    %c0 = arith.constant 0 : index
    %c0_0 = arith.constant 0 : index
    %0 = vector.load %arg1[%c0, %c0_0] : memref<8x512xf32, #tpu.memory_space<vmem>>, vector<8x512xf32>
    %1 = tpu.iota {dimensions = array<i32: 1>} : vector<8x512xi32>
    %c15_i32 = arith.constant 15 : i32
    %2 = vector.broadcast %c15_i32 : i32 to vector<8x512xi32>
    %3 = arith.andi %1, %2 : vector<8x512xi32>
    %c4_i32 = arith.constant 4 : i32
    %4 = vector.broadcast %c4_i32 : i32 to vector<8x512xi32>
    %5 = arith.shrsi %1, %4 : vector<8x512xi32>
    %c15_i32_1 = arith.constant 15 : i32
    %6 = vector.broadcast %c15_i32_1 : i32 to vector<8x512xi32>
    %7 = arith.andi %5, %6 : vector<8x512xi32>
    %c1_i32 = arith.constant 1 : i32
    %8 = vector.broadcast %c1_i32 : i32 to vector<8x512xi32>
    %9 = arith.cmpi sge, %7, %8 : vector<8x512xi32>
    %c14_i32 = arith.constant 14 : i32
    %10 = vector.broadcast %c14_i32 : i32 to vector<8x512xi32>
    %11 = arith.cmpi sle, %7, %10 : vector<8x512xi32>
    %c1_i32_2 = arith.constant 1 : i32
    %12 = vector.broadcast %c1_i32_2 : i32 to vector<8x512xi32>
    %13 = arith.cmpi sge, %3, %12 : vector<8x512xi32>
    %c14_i32_3 = arith.constant 14 : i32
    %14 = vector.broadcast %c14_i32_3 : i32 to vector<8x512xi32>
    %15 = arith.cmpi sle, %3, %14 : vector<8x512xi32>
    %16 = arith.andi %9, %13 : vector<8x512xi1>
    %17 = arith.extui %16 : vector<8x512xi1> to vector<8x512xi32>
    %18 = arith.sitofp %17 : vector<8x512xi32> to vector<8x512xf32>
    %19 = arith.extui %9 : vector<8x512xi1> to vector<8x512xi32>
    %20 = arith.sitofp %19 : vector<8x512xi32> to vector<8x512xf32>
    %21 = arith.andi %9, %15 : vector<8x512xi1>
    %22 = arith.extui %21 : vector<8x512xi1> to vector<8x512xi32>
    %23 = arith.sitofp %22 : vector<8x512xi32> to vector<8x512xf32>
    %24 = arith.extui %13 : vector<8x512xi1> to vector<8x512xi32>
    %25 = arith.sitofp %24 : vector<8x512xi32> to vector<8x512xf32>
    %26 = arith.extui %15 : vector<8x512xi1> to vector<8x512xi32>
    %27 = arith.sitofp %26 : vector<8x512xi32> to vector<8x512xf32>
    %28 = arith.andi %11, %13 : vector<8x512xi1>
    %29 = arith.extui %28 : vector<8x512xi1> to vector<8x512xi32>
    %30 = arith.sitofp %29 : vector<8x512xi32> to vector<8x512xf32>
    %31 = arith.extui %11 : vector<8x512xi1> to vector<8x512xi32>
    %32 = arith.sitofp %31 : vector<8x512xi32> to vector<8x512xf32>
    %33 = arith.andi %11, %15 : vector<8x512xi1>
    %34 = arith.extui %33 : vector<8x512xi1> to vector<8x512xi32>
    %35 = arith.sitofp %34 : vector<8x512xi32> to vector<8x512xf32>
    %c0_4 = arith.constant 0 : index
    %c0_5 = arith.constant 0 : index
    %36 = vector.load %arg3[%c0_4, %c0_5] : memref<8x6xf32, #tpu.memory_space<vmem>>, vector<8x1xf32>
    %c0_6 = arith.constant 0 : index
    %c1 = arith.constant 1 : index
    %37 = vector.load %arg3[%c0_6, %c1] : memref<8x6xf32, #tpu.memory_space<vmem>>, vector<8x1xf32>
    %c0_7 = arith.constant 0 : index
    %c2 = arith.constant 2 : index
    %38 = vector.load %arg3[%c0_7, %c2] : memref<8x6xf32, #tpu.memory_space<vmem>>, vector<8x1xf32>
    %c0_8 = arith.constant 0 : index
    %c3 = arith.constant 3 : index
    %39 = vector.load %arg3[%c0_8, %c3] : memref<8x6xf32, #tpu.memory_space<vmem>>, vector<8x1xf32>
    %c0_9 = arith.constant 0 : index
    %c4 = arith.constant 4 : index
    %40 = vector.load %arg3[%c0_9, %c4] : memref<8x6xf32, #tpu.memory_space<vmem>>, vector<8x1xf32>
    %c0_10 = arith.constant 0 : index
    %c5 = arith.constant 5 : index
    %41 = vector.load %arg3[%c0_10, %c5] : memref<8x6xf32, #tpu.memory_space<vmem>>, vector<8x1xf32>
    %c17_i32 = arith.constant 17 : i32
    %42 = tpu.dynamic_rotate %0 by %c17_i32 dim 1 : vector<8x512xf32>, i32 -> vector<8x512xf32>
    %43 = arith.mulf %42, %18 : vector<8x512xf32>
    %c16_i32 = arith.constant 16 : i32
    %44 = tpu.dynamic_rotate %0 by %c16_i32 dim 1 : vector<8x512xf32>, i32 -> vector<8x512xf32>
    %45 = arith.mulf %44, %20 : vector<8x512xf32>
    %c15_i32_11 = arith.constant 15 : i32
    %46 = tpu.dynamic_rotate %0 by %c15_i32_11 dim 1 : vector<8x512xf32>, i32 -> vector<8x512xf32>
    %47 = arith.mulf %46, %23 : vector<8x512xf32>
    %c1_i32_12 = arith.constant 1 : i32
    %48 = tpu.dynamic_rotate %0 by %c1_i32_12 dim 1 : vector<8x512xf32>, i32 -> vector<8x512xf32>
    %49 = arith.mulf %48, %25 : vector<8x512xf32>
    %c511_i32 = arith.constant 511 : i32
    %50 = tpu.dynamic_rotate %0 by %c511_i32 dim 1 : vector<8x512xf32>, i32 -> vector<8x512xf32>
    %51 = arith.mulf %50, %27 : vector<8x512xf32>
    %c497_i32 = arith.constant 497 : i32
    %52 = tpu.dynamic_rotate %0 by %c497_i32 dim 1 : vector<8x512xf32>, i32 -> vector<8x512xf32>
    %53 = arith.mulf %52, %30 : vector<8x512xf32>
    %c496_i32 = arith.constant 496 : i32
    %54 = tpu.dynamic_rotate %0 by %c496_i32 dim 1 : vector<8x512xf32>, i32 -> vector<8x512xf32>
    %55 = arith.mulf %54, %32 : vector<8x512xf32>
    %c495_i32 = arith.constant 495 : i32
    %56 = tpu.dynamic_rotate %0 by %c495_i32 dim 1 : vector<8x512xf32>, i32 -> vector<8x512xf32>
    %57 = arith.mulf %56, %35 : vector<8x512xf32>
    %58 = tpu.concatenate %43, %45, %47, %49, %0, %51, %53, %55, %57 in 0 : vector<8x512xf32>, vector<8x512xf32>, vector<8x512xf32>, vector<8x512xf32>, vector<8x512xf32>, vector<8x512xf32>, vector<8x512xf32>, vector<8x512xf32>, vector<8x512xf32> -> vector<72x512xf32>
    %c0_13 = arith.constant 0 : index
    %c0_14 = arith.constant 0 : index
    %59 = vector.load %arg2[%c0_13, %c0_14] : memref<24x72xf32, #tpu.memory_space<vmem>>, vector<16x72xf32>
    %cst = arith.constant dense<0.000000e+00> : vector<16x512xf32>
    %60 = tpu.matmul %59, %58, %cst {dimension_numbers = #tpu.dot_dimension_numbers<[1], [0], [0], [1], [0, 0, 1, 1], [], []>, precision = #tpu.contract_precision<fp32>} : vector<16x72xf32>, vector<72x512xf32>, vector<16x512xf32> -> vector<16x512xf32>
    %61 = vector.extract_strided_slice %60 {offsets = [0, 0], sizes = [8, 512], strides = [1, 1]} : vector<16x512xf32> to vector<8x512xf32>
    %cst_15 = arith.constant dense<0.000000e+00> : vector<8xf32>
    %62 = vector.multi_reduction <add>, %61, %cst_15 [1] : vector<8x512xf32> to vector<8xf32>
    %63 = vector.shape_cast %62 : vector<8xf32> to vector<8x1xf32>
    %cst_16 = arith.constant 0.001953125 : f32
    %64 = vector.broadcast %cst_16 : f32 to vector<8x1xf32>
    %65 = arith.mulf %63, %64 : vector<8x1xf32>
    %66 = arith.mulf %61, %61 : vector<8x512xf32>
    %cst_17 = arith.constant dense<0.000000e+00> : vector<8xf32>
    %67 = vector.multi_reduction <add>, %66, %cst_17 [1] : vector<8x512xf32> to vector<8xf32>
    %68 = vector.shape_cast %67 : vector<8xf32> to vector<8x1xf32>
    %cst_18 = arith.constant 0.001953125 : f32
    %69 = vector.broadcast %cst_18 : f32 to vector<8x1xf32>
    %70 = arith.mulf %68, %69 : vector<8x1xf32>
    %71 = arith.mulf %65, %65 : vector<8x1xf32>
    %72 = arith.subf %70, %71 : vector<8x1xf32>
    %cst_19 = arith.constant 0.000000e+00 : f32
    %73 = vector.broadcast %cst_19 : f32 to vector<8x1xf32>
    %74 = arith.maximumf %72, %73 : vector<8x1xf32>
    %cst_20 = arith.constant 9.99999974E-6 : f32
    %75 = vector.broadcast %cst_20 : f32 to vector<8x1xf32>
    %76 = arith.addf %74, %75 : vector<8x1xf32>
    %77 = math.rsqrt %76 : vector<8x1xf32>
    %78 = arith.mulf %36, %77 : vector<8x1xf32>
    %79 = vector.broadcast %78 : vector<8x1xf32> to vector<8x512xf32>
    %80 = arith.mulf %61, %79 : vector<8x512xf32>
    %81 = arith.mulf %65, %78 : vector<8x1xf32>
    %82 = arith.subf %37, %81 : vector<8x1xf32>
    %83 = vector.broadcast %82 : vector<8x1xf32> to vector<8x512xf32>
    %84 = arith.addf %80, %83 : vector<8x512xf32>
    %cst_21 = arith.constant 0.000000e+00 : f32
    %85 = vector.broadcast %cst_21 : f32 to vector<8x512xf32>
    %86 = arith.maximumf %84, %85 : vector<8x512xf32>
    %87 = vector.extract_strided_slice %60 {offsets = [8, 0], sizes = [8, 512], strides = [1, 1]} : vector<16x512xf32> to vector<8x512xf32>
    %cst_22 = arith.constant dense<0.000000e+00> : vector<8xf32>
    %88 = vector.multi_reduction <add>, %87, %cst_22 [1] : vector<8x512xf32> to vector<8xf32>
    %89 = vector.shape_cast %88 : vector<8xf32> to vector<8x1xf32>
    %cst_23 = arith.constant 0.001953125 : f32
    %90 = vector.broadcast %cst_23 : f32 to vector<8x1xf32>
    %91 = arith.mulf %89, %90 : vector<8x1xf32>
    %92 = arith.mulf %87, %87 : vector<8x512xf32>
    %cst_24 = arith.constant dense<0.000000e+00> : vector<8xf32>
    %93 = vector.multi_reduction <add>, %92, %cst_24 [1] : vector<8x512xf32> to vector<8xf32>
    %94 = vector.shape_cast %93 : vector<8xf32> to vector<8x1xf32>
    %cst_25 = arith.constant 0.001953125 : f32
    %95 = vector.broadcast %cst_25 : f32 to vector<8x1xf32>
    %96 = arith.mulf %94, %95 : vector<8x1xf32>
    %97 = arith.mulf %91, %91 : vector<8x1xf32>
    %98 = arith.subf %96, %97 : vector<8x1xf32>
    %cst_26 = arith.constant 0.000000e+00 : f32
    %99 = vector.broadcast %cst_26 : f32 to vector<8x1xf32>
    %100 = arith.maximumf %98, %99 : vector<8x1xf32>
    %cst_27 = arith.constant 9.99999974E-6 : f32
    %101 = vector.broadcast %cst_27 : f32 to vector<8x1xf32>
    %102 = arith.addf %100, %101 : vector<8x1xf32>
    %103 = math.rsqrt %102 : vector<8x1xf32>
    %104 = arith.mulf %40, %103 : vector<8x1xf32>
    %105 = vector.broadcast %104 : vector<8x1xf32> to vector<8x512xf32>
    %106 = arith.mulf %87, %105 : vector<8x512xf32>
    %107 = arith.mulf %91, %104 : vector<8x1xf32>
    %108 = arith.subf %41, %107 : vector<8x1xf32>
    %109 = vector.broadcast %108 : vector<8x1xf32> to vector<8x512xf32>
    %110 = arith.addf %106, %109 : vector<8x512xf32>
    %c16 = arith.constant 16 : index
    %c0_28 = arith.constant 0 : index
    %111 = vector.load %arg2[%c16, %c0_28] : memref<24x72xf32, #tpu.memory_space<vmem>>, vector<8x72xf32>
    %c17_i32_29 = arith.constant 17 : i32
    %112 = tpu.dynamic_rotate %86 by %c17_i32_29 dim 1 : vector<8x512xf32>, i32 -> vector<8x512xf32>
    %113 = arith.mulf %112, %18 : vector<8x512xf32>
    %c16_i32_30 = arith.constant 16 : i32
    %114 = tpu.dynamic_rotate %86 by %c16_i32_30 dim 1 : vector<8x512xf32>, i32 -> vector<8x512xf32>
    %115 = arith.mulf %114, %20 : vector<8x512xf32>
    %c15_i32_31 = arith.constant 15 : i32
    %116 = tpu.dynamic_rotate %86 by %c15_i32_31 dim 1 : vector<8x512xf32>, i32 -> vector<8x512xf32>
    %117 = arith.mulf %116, %23 : vector<8x512xf32>
    %c1_i32_32 = arith.constant 1 : i32
    %118 = tpu.dynamic_rotate %86 by %c1_i32_32 dim 1 : vector<8x512xf32>, i32 -> vector<8x512xf32>
    %119 = arith.mulf %118, %25 : vector<8x512xf32>
    %c511_i32_33 = arith.constant 511 : i32
    %120 = tpu.dynamic_rotate %86 by %c511_i32_33 dim 1 : vector<8x512xf32>, i32 -> vector<8x512xf32>
    %121 = arith.mulf %120, %27 : vector<8x512xf32>
    %c497_i32_34 = arith.constant 497 : i32
    %122 = tpu.dynamic_rotate %86 by %c497_i32_34 dim 1 : vector<8x512xf32>, i32 -> vector<8x512xf32>
    %123 = arith.mulf %122, %30 : vector<8x512xf32>
    %c496_i32_35 = arith.constant 496 : i32
    %124 = tpu.dynamic_rotate %86 by %c496_i32_35 dim 1 : vector<8x512xf32>, i32 -> vector<8x512xf32>
    %125 = arith.mulf %124, %32 : vector<8x512xf32>
    %c495_i32_36 = arith.constant 495 : i32
    %126 = tpu.dynamic_rotate %86 by %c495_i32_36 dim 1 : vector<8x512xf32>, i32 -> vector<8x512xf32>
    %127 = arith.mulf %126, %35 : vector<8x512xf32>
    %128 = tpu.concatenate %113, %115, %117, %119, %86, %121, %123, %125, %127 in 0 : vector<8x512xf32>, vector<8x512xf32>, vector<8x512xf32>, vector<8x512xf32>, vector<8x512xf32>, vector<8x512xf32>, vector<8x512xf32>, vector<8x512xf32>, vector<8x512xf32> -> vector<72x512xf32>
    %cst_37 = arith.constant dense<0.000000e+00> : vector<8x512xf32>
    %129 = tpu.matmul %111, %128, %cst_37 {dimension_numbers = #tpu.dot_dimension_numbers<[1], [0], [0], [1], [0, 0, 1, 1], [], []>, precision = #tpu.contract_precision<fp32>} : vector<8x72xf32>, vector<72x512xf32>, vector<8x512xf32> -> vector<8x512xf32>
    %cst_38 = arith.constant dense<0.000000e+00> : vector<8xf32>
    %130 = vector.multi_reduction <add>, %129, %cst_38 [1] : vector<8x512xf32> to vector<8xf32>
    %131 = vector.shape_cast %130 : vector<8xf32> to vector<8x1xf32>
    %cst_39 = arith.constant 0.001953125 : f32
    %132 = vector.broadcast %cst_39 : f32 to vector<8x1xf32>
    %133 = arith.mulf %131, %132 : vector<8x1xf32>
    %134 = arith.mulf %129, %129 : vector<8x512xf32>
    %cst_40 = arith.constant dense<0.000000e+00> : vector<8xf32>
    %135 = vector.multi_reduction <add>, %134, %cst_40 [1] : vector<8x512xf32> to vector<8xf32>
    %136 = vector.shape_cast %135 : vector<8xf32> to vector<8x1xf32>
    %cst_41 = arith.constant 0.001953125 : f32
    %137 = vector.broadcast %cst_41 : f32 to vector<8x1xf32>
    %138 = arith.mulf %136, %137 : vector<8x1xf32>
    %139 = arith.mulf %133, %133 : vector<8x1xf32>
    %140 = arith.subf %138, %139 : vector<8x1xf32>
    %cst_42 = arith.constant 0.000000e+00 : f32
    %141 = vector.broadcast %cst_42 : f32 to vector<8x1xf32>
    %142 = arith.maximumf %140, %141 : vector<8x1xf32>
    %cst_43 = arith.constant 9.99999974E-6 : f32
    %143 = vector.broadcast %cst_43 : f32 to vector<8x1xf32>
    %144 = arith.addf %142, %143 : vector<8x1xf32>
    %145 = math.rsqrt %144 : vector<8x1xf32>
    %146 = arith.mulf %38, %145 : vector<8x1xf32>
    %147 = vector.broadcast %146 : vector<8x1xf32> to vector<8x512xf32>
    %148 = arith.mulf %129, %147 : vector<8x512xf32>
    %149 = arith.mulf %133, %146 : vector<8x1xf32>
    %150 = arith.subf %39, %149 : vector<8x1xf32>
    %151 = vector.broadcast %150 : vector<8x1xf32> to vector<8x512xf32>
    %152 = arith.addf %148, %151 : vector<8x512xf32>
    %153 = arith.addf %152, %110 : vector<8x512xf32>
    %cst_44 = arith.constant 0.000000e+00 : f32
    %154 = vector.broadcast %cst_44 : f32 to vector<8x512xf32>
    %155 = arith.maximumf %153, %154 : vector<8x512xf32>
    %156 = vector.extract_strided_slice %155 {offsets = [0, 0], sizes = [8, 256], strides = [1, 1]} : vector<8x512xf32> to vector<8x256xf32>
    %c0_45 = arith.constant 0 : index
    %c0_46 = arith.constant 0 : index
    %157 = vector.load %arg4[%c0_45, %c0_46] : memref<16x256xf32, #tpu.memory_space<vmem>>, vector<8x256xf32>
    tpu.vector_store %arg4[%c0_45, %c0_46], %156 {strides = array<i32>} : memref<16x256xf32, #tpu.memory_space<vmem>>, vector<8x256xf32>,
    %158 = vector.extract_strided_slice %155 {offsets = [0, 256], sizes = [8, 256], strides = [1, 1]} : vector<8x512xf32> to vector<8x256xf32>
    %c8 = arith.constant 8 : index
    %c0_47 = arith.constant 0 : index
    %159 = vector.load %arg4[%c8, %c0_47] : memref<16x256xf32, #tpu.memory_space<vmem>>, vector<8x256xf32>
    tpu.vector_store %arg4[%c8, %c0_47], %158 {strides = array<i32>} : memref<16x256xf32, #tpu.memory_space<vmem>>, vector<8x256xf32>,
    return
  }
  func.func @transform_0(%arg0: i32) -> (i32, i32) {
    %c0_i32 = arith.constant 0 : i32
    %c0_i32_0 = arith.constant 0 : i32
    %c0_i32_1 = arith.constant 0 : i32
    return %c0_i32, %c0_i32_0 : i32, i32
  }
  func.func @transform_1(%arg0: i32) -> (i32, i32) {
    %c0_i32 = arith.constant 0 : i32
    %c0_i32_0 = arith.constant 0 : i32
    %c0_i32_1 = arith.constant 0 : i32
    return %c0_i32, %c0_i32_0 : i32, i32
  }
  func.func @transform_2(%arg0: i32) -> (i32, i32) {
    %c0_i32 = arith.constant 0 : i32
    %c0_i32_0 = arith.constant 0 : i32
    %c0_i32_1 = arith.constant 0 : i32
    return %c0_i32, %c0_i32_0 : i32, i32
  }
  func.func @transform_3(%arg0: i32) -> (i32, i32) {
    %c0_i32 = arith.constant 0 : i32
    %c0_i32_0 = arith.constant 0 : i32
    %c0_i32_1 = arith.constant 0 : i32
    return %c0_i32, %c0_i32_0 : i32, i32
  }
}

</mosaic_0001>

<bundles_post_ra>
// kernel: basic_block_forward.1
= control target key start
LH: loop header
LB: loop body
LE: loop exit
PB: predicated region body
PF: predicated region fallthrough
CT: control target
= control target key end

     0   :  { %v5952_v1 = vmov 0.0   ;;  %s3863_s14 = smov 16   ;;  %s3864_s15 = smov 17   ;;  %vm5940_vm0 = vcmask 588800   ;;  %v18_v7 = vlaneseq  ;;  %v6169_v29 = vmov 0  ;;  %s5936_s0 = inlined_call_operand.vmem [shape: f32[8,512], index: 0, kind: input, shape index: {}]   ;;  %s5937_s1 = inlined_call_operand.vmem [shape: f32[24,72], index: 1, kind: input, shape index: {}]   ;;  %s5938_s2 = inlined_call_operand.vmem [shape: f32[8,6], index: 2, kind: input, shape index: {}]   ;;  %s5939_s3 = inlined_call_operand.vmem [shape: f32[16,256], index: 3, kind: output, shape index: {}]  }
   0x1   :  { %v3900_v0 = vld [vmem:[%s5936_s0] sm:$0xff]  ;;  %359 = vmatprep.mubr.f32.mxu0 %v5952_v1  ;;  %1081 = vmatprep.mubr.f32.mxu1 %v5952_v1  ;;  %v3911_v2 = vld [vmem:[%s5936_s0 + $0x8] sm:$0xff]  ;;  %v3920_v3 = vld [vmem:[%s5936_s0 + $0x18] sm:$0xff]  ;;  %s3865_s22 = smov 15   ;;  %s3866_s23 = smov 1  }
   0x2   :  { %149 = vrot.lane.b32.xlu1 %v3900_v0, %s3863_s14  ;;  %132 = vrot.lane.b32.xlu0 %v3900_v0, %s3864_s15  ;;  %v3929_v4 = vld [vmem:[%s5936_s0 + $0x10] sm:$0xff]  ;;  %s3867_s0 = smov 127   ;;  %s3868_s24 = smov 113   ;;  %v3989_v8 = vand.u32 127, %v18_v7  ;;  %v5949_v39 = vand.u32 4294901760, %v3911_v2  ;;  %v268_v53 = vld [vmem:[%s5937_s1] sm:$0xff] }
   0x3   :  { %s3869_s25 = smov 112   ;;  %v1817_v5 = vld [vmem:[%s5937_s1 + $0x10] sm:$0xff]  ;;  %s3870_s28 = smov 111   ;;  %v5946_v56 = vand.u32 4294901760, %v3920_v3  ;;  %v5947_v57 = vand.u32 4294901760, %v3900_v0  ;;  %v5948_v62 = vand.u32 4294901760, %v3929_v4 }
   0x4   :  { %v3979_v6 = vsel %vm5940_vm0, %v1817_v5, 0  ;;  %6158 = vst [vmem:[#allocation3_spill] sm:$0xff] %v3989_v8  ;;  %v20_v9 = vadd.s32 128, %v3989_v8  ;;  %v21_v10 = vadd.s32 256, %v3989_v8  ;;  %v22_v11 = vadd.s32 384, %v3989_v8 }
   0x5   :  { %6157 = vst [vmem:[#allocation2_spill] sm:$0xff] %v3979_v6  ;;  %v27_v12 = vshra.s32 %v3989_v8, 4  ;;  %v23_v17 = vand.u32 15, %v3989_v8  ;;  %v4167_v55 = vsub.f32 %v3911_v2, %v5949_v39  ;;  %v4242_v34 = vsub.f32 %v3929_v4, %v5948_v62 }
   0x6   :  { %151 = vrot.lane.b32.xlu1 %v3911_v2, %s3863_s14  ;;  %134 = vrot.lane.b32.xlu0 %v3911_v2, %s3864_s15  ;;  %v28_v13 = vshra.s32 %v20_v9, 4  ;;  %v29_v14 = vshra.s32 %v21_v10, 4  ;;  %v30_v15 = vshra.s32 %v22_v11, 4  ;;  %v24_v19 = vand.u32 15, %v20_v9 }
   0x7   :  { %v3995_v16 = vand.u32 15, %v27_v12  ;;  %v25_v21 = vand.u32 15, %v21_v10  ;;  %v26_v23 = vand.u32 15, %v22_v11  ;;  %vm4005_vm2 = vcmp.ge.s32.totalorder %v23_v17, 1  ;;  %6204 = vst [vmem:[#allocation19_spill] sm:$0xff] %v4167_v55  ;;  %6219 = vst [vmem:[#allocation28_spill] sm:$0xff] %v4242_v34 }
   0x8   :  { %v3998_v18 = vand.u32 15, %v28_v13  ;;  %v4000_v20 = vand.u32 15, %v29_v14  ;;  %v4002_v22 = vand.u32 15, %v30_v15  ;;  %vm4010_vm4 = vcmp.ge.s32.totalorder %v24_v19, 1  ;;  %v269_v14 = vld [vmem:[%s5937_s1 + $0x8] sm:$0xff] }
   0x9   :  { %vm5942_vm1 = vcmp.ge.s32.totalorder %v3995_v16, 1  ;;  %vm4015_vm6 = vcmp.ge.s32.totalorder %v25_v21, 1  ;;  %vm4024_vm9 = vcmp.ge.s32.totalorder %v26_v23, 1  ;;  %vm4036_vm11 = vcmp.le.s32.totalorder %v24_v19, 14 }
   0xa   :  { %155 = vrot.lane.b32.xlu1 %v3920_v3, %s3863_s14  ;;  %138 = vrot.lane.b32.xlu0 %v3920_v3, %s3864_s15  ;;  %vm36_vm3 = vcmp.ge.s32.totalorder %v3998_v18, 1  ;;  %vm5941_vm5 = vcmp.ge.s32.totalorder %v4000_v20, 1  ;;  %vm51_vm7 = vmand %vm5942_vm1, %vm4005_vm2  ;;  %vm5943_vm8 = vcmp.ge.s32.totalorder %v4002_v22, 1  ;;  %v6170_v29 = vsel %vm4036_vm11, 4294967295, %v6169_v29 }
   0xb   :  { %vm4032_vm10 = vmand %vm36_vm3, %vm4010_vm4  ;;  %vm4048_vm13 = vcmp.le.s32.totalorder %v23_v17, 14  ;;  %vm4060_vm15 = vcmp.le.s32.totalorder %v25_v21, 14  ;;  %v4081_v36 = vsel %vm36_vm3, 1.0, %v5952_v1  ;;  %v4089_v38 = vsel %vm51_vm7, 1.0, %v5952_v1 }
   0xc   :  { %vm4044_vm12 = vmand %vm5941_vm5, %vm4015_vm6  ;;  %6183 = vst [vmem:[#allocation4_spill] sm:$0xff] %v4081_v36  ;;  %vm6184_vm5 = vcmp.ge.s32.totalorder %v3995_v16, 1  ;;  %v4099_v42 = vsel %vm4032_vm10, 1.0, %v5952_v1  ;;  %v4114_v45 = vsel %vm4010_vm4, 1.0, %v5952_v1  ;;  %v4133_v48 = vsel %vm4005_vm2, 1.0, %v5952_v1 }
   0xd   :  { %vm4056_vm14 = vmand %vm5943_vm8, %vm4024_vm9  ;;  %vm4074_vm8 = vcmp.le.s32.totalorder %v26_v23, 14  ;;  %v4086_v37 = vsel %vm6184_vm5, 1.0, %v5952_v1  ;;  %6186 = vst [vmem:[#allocation6_spill] sm:$0xff] %v4089_v38  ;;  %v4123_v46 = vsel %vm4044_vm12, 1.0, %v5952_v1  ;;  %v4151_v51 = vsel %vm4015_vm6, 1.0, %v5952_v1 }
   0xe   :  { %153 = vrot.lane.b32.xlu1 %v3929_v4, %s3863_s14  ;;  %136 = vrot.lane.b32.xlu0 %v3929_v4, %s3864_s15  ;;  %vm4070_vm1 = vmand %vm36_vm3, %vm4036_vm11  ;;  %6185 = vst [vmem:[#allocation5_spill] sm:$0xff] %v4086_v37  ;;  %vm6189_vm3 = vcmp.ge.s32.totalorder %v4000_v20, 1  ;;  %v4128_v47 = vsel %vm4056_vm14, 1.0, %v5952_v1  ;;  %v4156_v52 = vsel %vm4024_vm9, 1.0, %v5952_v1  ;;  %vm39_vm12 = vcmp.le.s32.totalorder %v3995_v16, 14 }
   0xf   :  { %vm6187_vm0 = vmmov %vm6184_vm5  ;;  %6188 = vst [vmem:[#allocation7_spill] sm:$0xff] %v4099_v42  ;;  %v4104_v43 = vsel %vm6189_vm3, 1.0, %v5952_v1  ;;  %vm6191_vm5 = vcmp.ge.s32.totalorder %v4002_v22, 1  ;;  %v4143_v49 = vsel %vm4070_vm1, 1.0, %v5952_v1  ;;  %vm6206_vm1 = vnez %v6170_v29 }
  0x10   :  { %vm71_vm11 = vmand %vm6187_vm0, %vm4048_vm13  ;;  %6190 = vst [vmem:[#allocation8_spill] sm:$0xff] %v4104_v43  ;;  %v4109_v44 = vsel %vm6191_vm5, 1.0, %v5952_v1  ;;  %v4177_v61 = vsel %vm6206_vm1, 1.0, %v5952_v1  ;;  %vm6208_vm14 = vcmp.lt.s32.totalorder %v3989_v8, 16  ;;  %v4192_v7 = vsel %vm4060_vm15, 1.0, %v5952_v1 }
  0x11   :  { %6192 = vst [vmem:[#allocation9_spill] sm:$0xff] %v4109_v44  ;;  %6193 = vst [vmem:[#allocation10_spill] sm:$0xff] %v4114_v45  ;;  %v4146_v50 = vsel %vm71_vm11, 1.0, %v5952_v1  ;;  %v4205_v12 = vsel %vm4048_vm13, 1.0, %v5952_v1  ;;  %v4210_v13 = vsel %vm4074_vm8, 1.0, %v5952_v1  ;;  %v4221_v17 = vsub.f32 %v3920_v3, %v5946_v56 }
  0x12   :  { %168 = vrot.lane.b32.xlu1 %v3911_v2, %s3865_s22  ;;  %166 = vrot.lane.b32.xlu0 %v3900_v0, %s3865_s22  ;;  %vm6194_vm0 = vmmov %vm6189_vm3  ;;  %6195 = vst [vmem:[#allocation11_spill] sm:$0xff] %v4123_v46  ;;  %v4226_v19 = vsub.f32 %v3900_v0, %v5947_v57  ;;  %v5957_v23 = vand.u32 4294901760, %v4167_v55  ;;  %v6260_v33 = vand.u32 4294901760, %v4242_v34 }
  0x13   :  { %vm73_vm7 = vmand %vm6194_vm0, %vm4060_vm15  ;;  %6196 = vst [vmem:[#allocation12_spill] sm:$0xff] %v4128_v47  ;;  %vm6209_vm0 = vcmp.lt.s32.totalorder %v3989_v8, 17 }
  0x14   :  { %6197 = vst [vmem:[#allocation13_spill] sm:$0xff] %v4133_v48  ;;  %vm6198_vm10 = vmmov %vm6191_vm5  ;;  %vm40_vm5 = vcmp.le.s32.totalorder %v3998_v18, 14  ;;  %v4162_v54 = vsel %vm73_vm7, 1.0, %v5952_v1  ;;  %vm6211_vm7 = vcmask 588800  }
  0x15   :  { %vm74_vm3 = vmand %vm6198_vm10, %vm4074_vm8  ;;  %6199 = vst [vmem:[#allocation14_spill] sm:$0xff] %v4143_v49  ;;  %v272_v9 = vsel %vm6211_vm7, %v268_v53, 0 }
  0x16   :  { %185 = vrot.lane.b32.xlu1 %v3911_v2, %s3866_s23  ;;  %183 = vrot.lane.b32.xlu0 %v3900_v0, %s3866_s23  ;;  %6200 = vst [vmem:[#allocation15_spill] sm:$0xff] %v4146_v50  ;;  %6201 = vst [vmem:[#allocation16_spill] sm:$0xff] %v4151_v51  ;;  %v4172_v60 = vsel %vm74_vm3, 1.0, %v5952_v1  ;;  %v4244_v24 = vand.u32 4294901760, %v272_v9 }
  0x17   :  { %6202 = vst [vmem:[#allocation17_spill] sm:$0xff] %v4156_v52  ;;  %6203 = vst [vmem:[#allocation18_spill] sm:$0xff] %v4162_v54 }
  0x18   :  { %6205 = vst [vmem:[#allocation20_spill] sm:$0xff] %v4172_v60  ;;  %6207 = vst [vmem:[#allocation21_spill] sm:$0xff] %v4177_v61 }
  0x19   :  { %vm100_vm11 = vmand %vm40_vm5, %vm4010_vm4  ;;  %6210 = vst [vmem:[#allocation22_spill] sm:$0xff] %v4192_v7  ;;  %vm174_vm4 = vcmp.lt.s32.totalorder %v3989_v8, 15 }
  0x1a   :  { %189 = vrot.lane.b32.xlu1 %v3920_v3, %s3866_s23  ;;  %172 = vrot.lane.b32.xlu0 %v3920_v3, %s3865_s22  ;;  %6212 = vst [vmem:[#allocation23_spill] sm:$0xff] %v4205_v12  ;;  %6213 = vst [vmem:[#allocation24_spill] sm:$0xff] %v4210_v13  ;;  %v4216_v15 = vsel %vm100_vm11, 1.0, %v5952_v1 }
  0x1b   :  { %6214 = vst [vmem:[#allocation25_spill] sm:$0xff] %v4216_v15  ;;  %6215 = vst [vmem:[#allocation26_spill] sm:$0xff] %v4221_v17 }
  0x1c   :  { %6216 = vst [vmem:[#allocation27_spill] sm:$0xff] %v4226_v19  ;;  %vm4232_vm10 = vmand %vm39_vm12, %vm4005_vm2 }
  0x1d   :  { %6220 = vst [vmem:[#allocation29_spill] sm:$0xff] %v4244_v24  ;;  %vm6221_vm2 = vmmov %vm6208_vm14 }
  0x1e   :  { %187 = vrot.lane.b32.xlu1 %v3929_v4, %s3866_s23  ;;  %170 = vrot.lane.b32.xlu0 %v3929_v4, %s3865_s22  ;;  %vm6222_vm3 = vmmov %vm6209_vm0 }
  0x1f   :  { %vm6224_vm11 = vmmov %vm6211_vm7 }
  0x20   :  { %v275_v56 = vsel %vm6224_vm11, %v269_v14, 0  ;;  %vm6230_vm7 = vmmov %vm6221_vm2  ;;  %vm42_vm11 = vcmp.le.s32.totalorder %v4002_v22, 14 }
  0x21   :  { %v4286_v6 = vand.u32 4294901760, %v275_v56 }
  0x22   :  { %204 = vrot.lane.b32.xlu1 %v3929_v4, %s3867_s0  ;;  %202 = vrot.lane.b32.xlu0 %v3911_v2, %s3867_s0 }
  0x23   :  { %6229 = vst [vmem:[#allocation35_spill] sm:$0xff] %v4286_v6 }
  0x26   :  { %206 = vrot.lane.b32.xlu1 %v3920_v3, %s3867_s0  ;;  %200 = vrot.lane.b32.xlu0 %v3900_v0, %s3867_s0 }
  0x2a   :  { %221 = vrot.lane.b32.xlu1 %v3929_v4, %s3868_s24  ;;  %219 = vrot.lane.b32.xlu0 %v3911_v2, %s3868_s24 }
  0x2e   :  { %238 = vrot.lane.b32.xlu1 %v3929_v4, %s3869_s25  ;;  %236 = vrot.lane.b32.xlu0 %v3911_v2, %s3869_s25 }
  0x32   :  { %234 = vrot.lane.b32.xlu1 %v3900_v0, %s3869_s25  ;;  %217 = vrot.lane.b32.xlu0 %v3900_v0, %s3868_s24 }
  0x36   :  { %240 = vrot.lane.b32.xlu1 %v3920_v3, %s3869_s25  ;;  %223 = vrot.lane.b32.xlu0 %v3920_v3, %s3868_s24 }
  0x3a   :  { %255 = vrot.lane.b32.xlu1 %v3929_v4, %s3870_s28  ;;  %253 = vrot.lane.b32.xlu0 %v3911_v2, %s3870_s28 }
  0x3e   :  { %257 = vrot.lane.b32.xlu1 %v3920_v3, %s3870_s28  ;;  %251 = vrot.lane.b32.xlu0 %v3900_v0, %s3870_s28 }
  0x74   :  { %v150_v40 = vpop.permute.xlu1 %149  ;;  %v133_v41 = vpop.permute.xlu0 %132 }
  0x78   :  { %v152_v58 = vpop.permute.xlu1 %151  ;;  %v135_v59 = vpop.permute.xlu0 %134 }
  0x79   :  { %v160_v63 = vsel %vm6208_vm14, %v150_v40, %v152_v58  ;;  %v143_v5 = vsel %vm6209_vm0, %v133_v41, %v135_v59  ;;  %vm191_vm14 = vcmp.lt.s32.totalorder %v3989_v8, 1  ;;  %vm41_vm0 = vcmp.le.s32.totalorder %v4000_v20, 14 }
  0x7a   :  { %v4196_v10 = vmul.f32 %v4081_v36, %v160_v63  ;;  %v4199_v11 = vmul.f32 %v4099_v42, %v143_v5  ;;  %v4253_v5 = vsel %vm40_vm5, 1.0, %v5952_v1 }
  0x7b   :  { %6223 = vst [vmem:[#allocation30_spill] sm:$0xff] %v4253_v5 }
  0x7c   :  { %v5955_v25 = vand.u32 4294901760, %v4196_v10  ;;  %v277_v28 = vand.u32 4294901760, %v4199_v11  ;;  %v156_v30 = vpop.permute.xlu1 %155  ;;  %v139_v32 = vpop.permute.xlu0 %138 }
  0x7d   :  { %v161_v53 = vsel %vm6221_vm2, %v156_v30, %v150_v40  ;;  %v144_v63 = vsel %vm6222_vm3, %v139_v32, %v133_v41  ;;  %v4264_v40 = vsel %vm39_vm12, 1.0, %v5952_v1  ;;  %v4269_v41 = vsel %vm4232_vm10, 1.0, %v5952_v1  ;;  %vm6231_vm10 = vmmov %vm6221_vm2 }
  0x7e   :  { %v162_v57 = vmul.f32 %v4086_v37, %v161_v53  ;;  %v4258_v62 = vmul.f32 %v4089_v38, %v144_v63  ;;  %6225 = vst [vmem:[#allocation31_spill] sm:$0xff] %v4264_v40  ;;  %6226 = vst [vmem:[#allocation32_spill] sm:$0xff] %v4269_v41  ;;  %v4273_v14 = vpack.c.bf16 %v5955_v25, %v277_v28 }
  0x7f   :  { %v4279_v53 = vsub.f32 %v4167_v55, %v5957_v23  ;;  %v4284_v1 = vsub.f32 %v272_v9, %v4244_v24  ;;  %vm6232_vm2 = vmmov %vm6222_vm3 }
  0x80   :  { %6227 = vst [vmem:[#allocation33_spill] sm:$0xff] %v4273_v14  ;;  %v283_v39 = vand.u32 4294901760, %v162_v57  ;;  %v279_v37 = vand.u32 4294901760, %v4258_v62  ;;  %v154_v36 = vpop.permute.xlu1 %153  ;;  %v137_v21 = vpop.permute.xlu0 %136  ;;  %3390 = vmatprep.subr.bf16.mxu0 %v4273_v14  ;;  %vm6233_vm3 = vmmov %vm6232_vm2  ;;  %v6247_v14 = vand.u32 4294901760, %v4226_v19 }
  0x81   :  { %6228 = vst [vmem:[#allocation34_spill] sm:$0xff] %v4284_v1  ;;  %v158_v25 = vsel %vm6230_vm7, %v154_v36, %v156_v30  ;;  %v159_v42 = vsel %vm6231_vm10, %v152_v58, %v154_v36  ;;  %v141_v23 = vsel %vm6232_vm2, %v137_v21, %v139_v32  ;;  %v142_v63 = vsel %vm6233_vm3, %v135_v59, %v137_v21  ;;  %vm4322_vm7 = vmand %vm41_vm0, %vm4015_vm6 }
  0x82   :  { %v4298_v38 = vmul.f32 %v4104_v43, %v159_v42  ;;  %v4301_v9 = vmul.f32 %v4109_v44, %v158_v25  ;;  %v4306_v36 = vmul.f32 %v4123_v46, %v142_v63  ;;  %v4309_v58 = vmul.f32 %v4128_v47, %v141_v23  ;;  %vm4344_vm6 = vmand %vm42_vm11, %vm4024_vm9 }
  0x83   :  { %v4311_v32 = vpack.c.bf16 %v283_v39, %v279_v37  ;;  %v4327_v23 = vand.u32 4294901760, %v4284_v1  ;;  %v6238_v59 = vand.u32 4294901760, %v4221_v17  ;;  %v6242_v46 = vmov 0.0   ;;  %vm4365_vm9 = vmand %vm40_vm5, %vm6206_vm1 }
  0x84   :  { %v1005_v21 = vand.u32 4294901760, %v4298_v38  ;;  %v4316_v25 = vpop.permute.xlu1 %168  ;;  %v167_v44 = vpop.permute.xlu0 %166  ;;  %v999_v30 = vand.u32 4294901760, %v4309_v58  ;;  %v4354_v43 = vsel %vm41_vm0, 1.0, %v6242_v46  ;;  %v4378_v55 = vsub.f32 %v162_v57, %v283_v39  ;;  %vm4393_vm5 = vmand %vm41_vm0, %vm4060_vm15 }
  0x85   :  { %6234 = vst [vmem:[#allocation36_spill] sm:$0xff] %v4311_v32  ;;  %6237 = vst [vmem:[#allocation37_spill] sm:$0xff] %v4327_v23  ;;  %v4332_v42 = vsub.f32 %v4221_v17, %v6238_v59  ;;  %3392 = vmatpush1.bf16.msra.mxu0 %v4311_v32  ;;  %v177_v26 = vsel %vm174_vm4, %v167_v44, %v4316_v25  ;;  %v4349_v59 = vsub.f32 %v275_v56, %v4286_v6 }
  0x86   :  { %6243 = vst [vmem:[#allocation39_spill] sm:$0xff] %v4354_v43  ;;  %v4359_v32 = vsel %vm42_vm11, 1.0, %v6242_v46  ;;  %v4373_v17 = vsub.f32 %v4226_v19, %v6247_v14  ;;  %v4376_v6 = vsub.f32 %v4199_v11, %v277_v28  ;;  %6249 = vst [vmem:[#allocation42_spill] sm:$0xff] %v4378_v55  ;;  %v6250_v29 = vand.u32 4294901760, %v4301_v9 }
  0x87   :  { %6241 = vst [vmem:[#allocation38_spill] sm:$0xff] %v4349_v59  ;;  %6244 = vst [vmem:[#allocation40_spill] sm:$0xff] %v4359_v32  ;;  %v4387_v18 = vsel %vm4322_vm7, 1.0, %v6242_v46  ;;  %v4398_v39 = vmul.f32 %v4143_v49, %v177_v26  ;;  %v6255_v28 = vand.u32 4294901760, %v4306_v36  ;;  %v4407_v63 = vsel %vm4344_vm6, 1.0, %v6242_v46 }
  0x88   :  { %6248 = vst [vmem:[#allocation41_spill] sm:$0xff] %v4376_v6  ;;  %v4382_v24 = vpack.c.bf16 %v6250_v29, %v999_v30  ;;  %6252 = vst [vmem:[#allocation44_spill] sm:$0xff] %v4387_v18  ;;  %v186_v57 = vpop.permute.xlu1 %185  ;;  %v184_v11 = vpop.permute.xlu0 %183  ;;  %v4420_v26 = vsub.f32 %v4242_v34, %v6260_v33  ;;  %v363_v31 = vsub.f32 %v4284_v1, %v4327_v23  ;;  %v4437_v33 = vand.u32 4294901760, %v4349_v59 }
  0x89   :  { %v4402_v29 = vpack.c.bf16 %v1005_v21, %v6255_v28  ;;  %6257 = vst [vmem:[#allocation46_spill] sm:$0xff] %v4407_v63  ;;  %vm4413_vm15 = vmand %vm39_vm12, %vm4048_vm13  ;;  %v194_v47 = vsel %vm191_vm14, %v184_v11, %v186_v57  ;;  %v4440_v56 = vsub.f32 %v4258_v62, %v279_v37  ;;  %v4450_v22 = vsel %vm4365_vm9, 1.0, %v6242_v46 }
  0x8a   :  { %6251 = vst [vmem:[#allocation43_spill] sm:$0xff] %v4382_v24  ;;  %3486 = vmatprep.subr.bf16.mxu1 %v4382_v24  ;;  %vm4429_vm1 = vmand %vm42_vm11, %vm4074_vm8  ;;  %v4443_v49 = vmul.f32 %v4114_v45, %v194_v47  ;;  %vm208_vm8 = vcmp.lt.s32.totalorder %v3989_v8, 127  ;;  %v6266_v28 = vand.u32 4294901760, %v4196_v10  ;;  %v4462_v62 = vsel %vm4393_vm5, 1.0, %v6242_v46 }
  0x8b   :  { %6256 = vst [vmem:[#allocation45_spill] sm:$0xff] %v4402_v29  ;;  %6263 = vst [vmem:[#allocation47_spill] sm:$0xff] %v4437_v33  ;;  %3488 = vmatpush1.bf16.msra.mxu1 %v4402_v29  ;;  %v285_v27 = vand.u32 4294901760, %v4398_v39  ;;  %v4481_v37 = vand.u32 4294901760, %v363_v31  ;;  %v374_v45 = vsub.f32 %v4349_v59, %v4437_v33  ;;  %v4502_v31 = vsub.f32 %v4298_v38, %v1005_v21 }
  0x8c   :  { %6264 = vst [vmem:[#allocation48_spill] sm:$0xff] %v4440_v56  ;;  %6265 = vst [vmem:[#allocation49_spill] sm:$0xff] %v4450_v22  ;;  %v4456_v23 = vsub.f32 %v4196_v10, %v6266_v28  ;;  %v190_v29 = vpop.permute.xlu1 %189  ;;  %v173_v35 = vpop.permute.xlu0 %172  ;;  %v4470_v10 = vsel %vm4413_vm15, 1.0, %v6242_v46  ;;  %v4475_v28 = vsel %vm4429_vm1, 1.0, %v6242_v46  ;;  %v6271_v1 = vand.u32 4294901760, %v4443_v49 }
  0x8d   :  { %6268 = vst [vmem:[#allocation51_spill] sm:$0xff] %v4462_v62  ;;  %6269 = vst [vmem:[#allocation52_spill] sm:$0xff] %v4470_v10  ;;  %v195_v14 = vsel %vm191_vm14, %v190_v29, %v184_v11  ;;  %v178_v47 = vsel %vm174_vm4, %v173_v35, %v167_v44  ;;  %v6273_v11 = vand.u32 4294901760, %v4378_v55  ;;  %v6275_v20 = vand.u32 4294901760, %v4376_v6 }
  0x8e   :  { %6267 = vst [vmem:[#allocation50_spill] sm:$0xff] %v4456_v23  ;;  %6270 = vst [vmem:[#allocation53_spill] sm:$0xff] %v4475_v28  ;;  %v4487_v24 = vmul.f32 %v4133_v48, %v195_v14  ;;  %v4490_v16 = vmul.f32 %v4146_v50, %v178_v47  ;;  %v4494_v34 = vpack.c.bf16 %v6271_v1, %v285_v27  ;;  %v6276_v48 = vand.u32 4294901760, %v4301_v9 }
  0x8f   :  { %v4499_v44 = vsub.f32 %v4378_v55, %v6273_v11  ;;  %6274 = vst [vmem:[#allocation55_spill] sm:$0xff] %v4502_v31  ;;  %v4507_v14 = vsub.f32 %v4376_v6, %v6275_v20  ;;  %v4516_v50 = vsub.f32 %v4309_v58, %v999_v30  ;;  %v6278_v30 = vand.u32 4294901760, %v4440_v56  ;;  %vm6407_vm10 = vmmov %vm6232_vm2 }
  0x90   :  { %6272 = vst [vmem:[#allocation54_spill] sm:$0xff] %v4494_v34  ;;  %v4513_v1 = vsub.f32 %v4301_v9, %v6276_v48  ;;  %v291_v11 = vand.u32 4294901760, %v4487_v24  ;;  %v287_v38 = vand.u32 4294901760, %v4490_v16  ;;  %v188_v21 = vpop.permute.xlu1 %187  ;;  %3394 = vmatprep.subr.bf16.mxu0 %v4494_v34  ;;  %v171_v33 = vpop.permute.xlu0 %170  ;;  %v6279_v59 = vand.u32 4294901760, %v4306_v36  ;;  %vm6415_vm11 = vmmov %vm6232_vm2 }
  0x91   :  { %6277 = vst [vmem:[#allocation56_spill] sm:$0xff] %v4516_v50  ;;  %v192_v20 = vsel %vm191_vm14, %v188_v21, %v190_v29  ;;  %v193_v47 = vsel %vm191_vm14, %v186_v57, %v188_v21  ;;  %v175_v48 = vsel %vm174_vm4, %v171_v33, %v173_v35  ;;  %v176_v9 = vsel %vm174_vm4, %v4316_v25, %v171_v33  ;;  %vm6416_vm7 = vmmov %vm6232_vm2 }
  0x92   :  { %v4533_v58 = vsub.f32 %v4440_v56, %v6278_v30  ;;  %v4538_v34 = vsub.f32 %v4306_v36, %v6279_v59  ;;  %v198_v29 = vmul.f32 %v4151_v51, %v193_v47  ;;  %v4542_v57 = vmul.f32 %v4156_v52, %v192_v20 }
  0x93   :  { %vm225_vm13 = vcmp.lt.s32.totalorder %v3989_v8, 113  ;;  %v181_v25 = vmul.f32 %v4162_v54, %v176_v9  ;;  %v4548_v33 = vmul.f32 %v4172_v60, %v175_v48  ;;  %v4550_v21 = vpack.c.bf16 %v291_v11, %v287_v38 }
  0x94   :  { %v1013_v36 = vand.u32 4294901760, %v198_v29  ;;  %v205_v59 = vpop.permute.xlu1 %204  ;;  %v203_v19 = vpop.permute.xlu0 %202  ;;  %v4556_v52 = vsub.f32 %v4398_v39, %v285_v27  ;;  %vm242_vm12 = vcmp.lt.s32.totalorder %v3989_v8, 112  ;;  %v386_v30 = vand.u32 4294901760, %v4507_v14 }
  0x95   :  { %6280 = vst [vmem:[#allocation57_spill] sm:$0xff] %v4550_v21  ;;  %v1007_v35 = vand.u32 4294901760, %v4548_v33  ;;  %v1009_v9 = vand.u32 4294901760, %v181_v25  ;;  %3396 = vmatpush1.bf16.msra.mxu0 %v4550_v21  ;;  %v210_v48 = vsel %vm208_vm8, %v203_v19, %v205_v59  ;;  %v6281_v51 = vand.u32 4294901760, %v4456_v23 }
  0x96   :  { %v392_v20 = vand.u32 4294901760, %v4533_v58  ;;  %v4568_v39 = vand.u32 4294901760, %v374_v45  ;;  %v4572_v54 = vmul.f32 %v4177_v61, %v210_v48  ;;  %v6282_v60 = vand.u32 4294901760, %v4542_v57 }
  0x97   :  { %v397_v47 = vsub.f32 %v4456_v23, %v6281_v51  ;;  %v404_v55 = vand.u32 4294901760, %v4499_v44  ;;  %v6284_v14 = vand.u32 4294901760, %v4502_v31  ;;  %v4584_v45 = vpack.c.bf16 %v1013_v36, %v1009_v9 }
  0x98   :  { %v4576_v21 = vpack.c.bf16 %v6282_v60, %v1007_v35  ;;  %v207_v51 = vpop.permute.xlu1 %206  ;;  %v201_v58 = vpop.permute.xlu0 %200  ;;  %v6286_v27 = vand.u32 4294901760, %v4516_v50  ;;  %v6287_v61 = vand.u32 4294901760, %v4513_v1  ;;  %v6288_v6 = vand.u32 4294901760, %v4443_v49 }
  0x99   :  { %v4582_v56 = vsub.f32 %v4502_v31, %v6284_v14  ;;  %6285 = vst [vmem:[#allocation59_spill] sm:$0xff] %v4584_v45  ;;  %v209_v44 = vsel %vm208_vm8, %v205_v59, %v207_v51  ;;  %v211_v14 = vsel %vm208_vm8, %v201_v58, %v203_v19  ;;  %v4612_v59 = vsub.f32 %v4487_v24, %v291_v11 }
  0x9a   :  { %6283 = vst [vmem:[#allocation58_spill] sm:$0xff] %v4576_v21  ;;  %v1107_v48 = vsub.f32 %v4516_v50, %v6286_v27  ;;  %v1119_v60 = vsub.f32 %v4513_v1, %v6287_v61  ;;  %3490 = vmatprep.subr.bf16.mxu1 %v4576_v21  ;;  %v4602_v27 = vsub.f32 %v4443_v49, %v6288_v6  ;;  %v6290_v31 = vand.u32 4294901760, %v3911_v2 }
  0x9b   :  { %v215_v50 = vmul.f32 %v4192_v7, %v209_v44  ;;  %v212_v61 = vsel %vm208_vm8, %v207_v51, %v201_v58  ;;  %v4608_v23 = vmul.f32 %v4205_v12, %v211_v14  ;;  %3492 = vmatpush1.bf16.msra.mxu1 %v4584_v45  ;;  %6289 = vst [vmem:[#allocation60_spill] sm:$0xff] %v4612_v59  ;;  %v6291_v6 = vand.u32 4294901760, %v4572_v54 }
  0x9c   :  { %v4615_v19 = vmul.f32 %v4210_v13, %v212_v61  ;;  %v398_v44 = vand.u32 4294901760, %v397_v47  ;;  %v6293_v51 = vand.u32 4294901760, %v4538_v34  ;;  %v4627_v14 = vsub.f32 %v4490_v16, %v287_v38  ;;  %v4630_v11 = vpop.permute.xlu1 %221  ;;  %v220_v61 = vpop.permute.xlu0 %219 }
  0x9d   :  { %v4621_v49 = vpack.c.bf16 %v6291_v6, %v6290_v31  ;;  %v1021_v7 = vand.u32 4294901760, %v215_v50  ;;  %v299_v24 = vand.u32 4294901760, %v4608_v23  ;;  %v4632_v13 = vsub.f32 %v198_v29, %v1013_v36 }
  0x9e   :  { %v1113_v58 = vsub.f32 %v4538_v34, %v6293_v51  ;;  %v227_v31 = vsel %vm225_vm13, %v220_v61, %v4630_v11  ;;  %v1108_v47 = vand.u32 4294901760, %v1107_v48  ;;  %v6295_v16 = vand.u32 4294901760, %v3900_v0 }
  0x9f   :  { %6292 = vst [vmem:[#allocation61_spill] sm:$0xff] %v4621_v49  ;;  %6294 = vst [vmem:[#allocation62_spill] sm:$0xff] %v4632_v13  ;;  %3398 = vmatprep.subr.bf16.mxu0 %v4621_v49  ;;  %v1120_v6 = vand.u32 4294901760, %v1119_v60  ;;  %v6297_v51 = vand.u32 4294901760, %v4556_v52  ;;  %v6025_v36 = vand.u32 4294901760, %v4612_v59  ;;  %v4650_v2 = vsub.f32 %v181_v25, %v1009_v9 }
  0xa0   :  { %v4641_v38 = vpack.c.bf16 %v299_v24, %v6295_v16  ;;  %v6299_v45 = vand.u32 4294901760, %v3920_v3  ;;  %v6300_v48 = vand.u32 4294901760, %v4615_v19  ;;  %v6302_v0 = vand.u32 4294901760, %v3929_v4  ;;  %v239_v29 = vpop.permute.xlu1 %238  ;;  %v237_v21 = vpop.permute.xlu0 %236 }
  0xa1   :  { %v4646_v12 = vsub.f32 %v4556_v52, %v6297_v51  ;;  %6298 = vst [vmem:[#allocation64_spill] sm:$0xff] %v4650_v2  ;;  %v6026_v16 = vand.u32 4294901760, %v4627_v14  ;;  %v4664_v51 = vmul.f32 %v4216_v15, %v227_v31  ;;  %v1114_v25 = vand.u32 4294901760, %v1113_v58 }
  0xa2   :  { %6296 = vst [vmem:[#allocation63_spill] sm:$0xff] %v4641_v38  ;;  %v4656_v49 = vpack.c.bf16 %v6300_v48, %v6299_v45  ;;  %v4660_v60 = vpack.c.bf16 %v1021_v7, %v6302_v0  ;;  %3400 = vmatpush1.bf16.msra.mxu0 %v4641_v38  ;;  %v1126_v3 = vand.u32 4294901760, %v4582_v56  ;;  %v4670_v45 = vsub.f32 %v4548_v33, %v1007_v35 }
  0xa3   :  { %v244_v4 = vsel %vm242_vm12, %v237_v21, %v239_v29  ;;  %v4675_v48 = vpack.c.bf16 %v404_v55, %v392_v20  ;;  %vm259_vm0 = vcmp.lt.s32.totalorder %v3989_v8, 111  ;;  %v4682_v56 = vpack.c.bf16 %v398_v44, %v386_v30 }
  0xa4   :  { %6301 = vst [vmem:[#allocation65_spill] sm:$0xff] %v4656_v49  ;;  %6303 = vst [vmem:[#allocation66_spill] sm:$0xff] %v4660_v60  ;;  %3494 = vmatprep.subr.bf16.mxu1 %v4656_v49  ;;  %v4678_v31 = vmul.f32 %v4253_v5, %v244_v4  ;;  %v4684_v58 = vpack.c.bf16 %v1120_v6, %v1108_v47  ;;  %v410_v35 = vand.u32 4294901760, %v4646_v12  ;;  %v6304_v55 = vand.u32 4294901760, %v4542_v57  ;;  %v235_v6 = vpop.permute.xlu1 %234 }
  0xa5   :  { %3496 = vmatpush1.bf16.msra.mxu1 %v4660_v60  ;;  %v4690_v33 = vsub.f32 %v4612_v59, %v6025_v36  ;;  %v6305_v4 = vand.u32 4294901760, %v4602_v27  ;;  %v4704_v12 = vsub.f32 %v4627_v14, %v6026_v16  ;;  %v301_v44 = vand.u32 4294901760, %v4664_v51  ;;  %v218_v36 = vpop.permute.xlu0 %217 }
  0xa6   :  { %v4695_v20 = vsub.f32 %v4542_v57, %v6304_v55  ;;  %v305_v47 = vand.u32 4294901760, %v4678_v31  ;;  %v4708_v9 = vpack.c.bf16 %v1126_v3, %v1114_v25  ;;  %v6306_v57 = vand.u32 4294901760, %v4632_v13 }
  0xa7   :  { %v421_v30 = vsub.f32 %v4602_v27, %v6305_v4  ;;  %v245_v4 = vsel %vm242_vm12, %v235_v6, %v237_v21  ;;  %v228_v16 = vsel %vm225_vm13, %v218_v36, %v220_v61  ;;  %v4720_v5 = vsub.f32 %v215_v50, %v1021_v7 }
  0xa8   :  { %v4713_v55 = vsub.f32 %v4632_v13, %v6306_v57  ;;  %v247_v15 = vmul.f32 %v4264_v40, %v245_v4  ;;  %v230_v25 = vmul.f32 %v4269_v41, %v228_v16  ;;  %v4724_v3 = vpack.c.bf16 %v305_v47, %v301_v44  ;;  %v241_v0 = vpop.permute.xlu1 %240 }
  0xa9   :  { %6307 = vst [vmem:[#allocation67_spill] sm:$0xff] %v4720_v5  ;;  %v6309_v60 = vand.u32 4294901760, %v4650_v2  ;;  %v6310_v21 = vand.u32 4294901760, %v4572_v54  ;;  %v422_v61 = vand.u32 4294901760, %v421_v30  ;;  %v4738_v7 = vsub.f32 %v4608_v23, %v299_v24  ;;  %v224_v40 = vpop.permute.xlu0 %223 }
  0xaa   :  { %6308 = vst [vmem:[#allocation68_spill] sm:$0xff] %v4724_v3  ;;  %v307_v4 = vand.u32 4294901760, %v247_v15  ;;  %v303_v16 = vand.u32 4294901760, %v230_v25  ;;  %3402 = vmatprep.subr.bf16.mxu0 %v4724_v3  ;;  %v243_v41 = vsel %vm242_vm12, %v239_v29, %v241_v0  ;;  %v226_v30 = vsel %vm225_vm13, %v4630_v11, %v224_v40 }
  0xab   :  { %v4729_v57 = vsub.f32 %v4650_v2, %v6309_v60  ;;  %v4734_v38 = vsub.f32 %v4572_v54, %v6310_v21  ;;  %v246_v54 = vsel %vm242_vm12, %v241_v0, %v235_v6  ;;  %v229_v23 = vsel %vm225_vm13, %v224_v40, %v218_v36 }
  0xac   :  { %v249_v21 = vmul.f32 %v4354_v43, %v243_v41  ;;  %v250_v50 = vmul.f32 %v4359_v32, %v246_v54  ;;  %v6311_v60 = vand.u32 4294901760, %v4670_v45  ;;  %v232_v0 = vmul.f32 %v4387_v18, %v226_v30  ;;  %v256_v24 = vpop.permute.xlu1 %255 }
  0xad   :  { %v233_v6 = vmul.f32 %v4407_v63, %v229_v23  ;;  %v4761_v3 = vpack.c.bf16 %v307_v4, %v303_v16  ;;  %v6313_v40 = vand.u32 4294901760, %v4615_v19  ;;  %v254_v32 = vpop.permute.xlu0 %253  ;;  %v3409_v11 = vpack.c.bf16 %v422_v61, %v410_v35 }
  0xae   :  { %v4757_v29 = vsub.f32 %v4670_v45, %v6311_v60  ;;  %v1027_v41 = vand.u32 4294901760, %v250_v50  ;;  %v1029_v54 = vand.u32 4294901760, %v249_v21  ;;  %v6314_v60 = vand.u32 4294901760, %v4695_v20 }
  0xaf   :  { %6312 = vst [vmem:[#allocation69_spill] sm:$0xff] %v4761_v3  ;;  %v4767_v36 = vsub.f32 %v4615_v19, %v6313_v40  ;;  %v1023_v30 = vand.u32 4294901760, %v233_v6  ;;  %v1025_v18 = vand.u32 4294901760, %v232_v0  ;;  %v261_v23 = vsel %vm259_vm0, %v254_v32, %v256_v24  ;;  %3404 = vmatpush1.bf16.msra.mxu0 %v4761_v3 }
  0xb0   :  { %v1143_v43 = vsub.f32 %v4695_v20, %v6314_v60  ;;  %v6315_v63 = vand.u32 4294901760, %v4720_v5  ;;  %v4782_v49 = vsub.f32 %v4664_v51, %v301_v44  ;;  %v428_v60 = vand.u32 4294901760, %v4690_v33  ;;  %v258_v3 = vpop.permute.xlu1 %257 }
  0xb1   :  { %v265_v13 = vmul.f32 %v4450_v22, %v261_v23  ;;  %v4786_v2 = vpack.c.bf16 %v1027_v41, %v1023_v30  ;;  %v1132_v59 = vand.u32 4294901760, %v4757_v29  ;;  %v6317_v35 = vand.u32 4294901760, %v4734_v38  ;;  %v252_v40 = vpop.permute.xlu0 %251 }
  0xb2   :  { %v4778_v19 = vsub.f32 %v4720_v5, %v6315_v63  ;;  %v4793_v63 = vsub.f32 %v4678_v31, %v305_v47  ;;  %v4795_v5 = vpack.c.bf16 %v1029_v54, %v1025_v18  ;;  %v1144_v51 = vand.u32 4294901760, %v1143_v43 }
  0xb3   :  { %6316 = vst [vmem:[#allocation70_spill] sm:$0xff] %v4786_v2  ;;  %v445_v61 = vsub.f32 %v4734_v38, %v6317_v35  ;;  %v4798_v44 = vsub.f32 %v250_v50, %v1027_v41  ;;  %v4800_v23 = vand.u32 4294901760, %v265_v13  ;;  %v260_v29 = vsel %vm259_vm0, %v256_v24, %v258_v3  ;;  %3498 = vmatprep.subr.bf16.mxu1 %v4786_v2 }
  0xb4   :  { %6318 = vst [vmem:[#allocation71_spill] sm:$0xff] %v4795_v5  ;;  %v262_v31 = vsel %vm259_vm0, %v252_v40, %v254_v32  ;;  %v4807_v47 = vsub.f32 %v233_v6, %v1023_v30  ;;  %v266_v35 = vmul.f32 %v4462_v62, %v260_v29  ;;  %v263_v43 = vsel %vm259_vm0, %v258_v3, %v252_v40 }
  0xb5   :  { %6319 = vst [vmem:[#allocation72_spill] sm:$0xff] %v4800_v23  ;;  %v264_v50 = vmul.f32 %v4470_v10, %v262_v31  ;;  %3500 = vmatpush1.bf16.msra.mxu1 %v4795_v5  ;;  %v4814_v41 = vsub.f32 %v247_v15, %v307_v4  ;;  %v4816_v33 = vsub.f32 %v230_v25, %v303_v16  ;;  %v446_v32 = vand.u32 4294901760, %v445_v61 }
  0xb6   :  { %v267_v24 = vmul.f32 %v4475_v28, %v263_v43  ;;  %310 = vmatprep.subr.mxu0 %v4800_v23  ;;  %v4820_v6 = vand.u32 4294901760, %v266_v35  ;;  %v6320_v29 = vand.u32 4294901760, %v4767_v36  ;;  %v6063_v40 = vand.u32 4294901760, %v4793_v63 }
  0xb7   :  { %v4822_v30 = vand.u32 4294901760, %v264_v50  ;;  %v4828_v31 = vsub.f32 %v249_v21, %v1029_v54  ;;  %v4830_v15 = vsub.f32 %v232_v0, %v1025_v18  ;;  %v6321_v16 = vand.u32 4294901760, %v4738_v7 }
  0xb8   :  { %v1167_v3 = vsub.f32 %v4767_v36, %v6320_v29  ;;  %v4832_v25 = vand.u32 4294901760, %v267_v24  ;;  %v6322_v43 = vand.u32 4294901760, %v4704_v12  ;;  %v6062_v29 = vand.u32 4294901760, %v4807_v47 }
  0xb9   :  { %v451_v61 = vsub.f32 %v4738_v7, %v6321_v16  ;;  %312 = vmatpush1.msra.mxu0 %v4822_v30  ;;  %v6054_v21 = vand.u32 4294901760, %v4798_v44  ;;  %v6055_v18 = vand.u32 4294901760, %v4814_v41  ;;  %v1138_v54 = vand.u32 4294901760, %v4729_v57 }
  0xba   :  { %v3411_v28 = vpack.c.bf16 %v428_v60, %v6322_v43  ;;  %1032 = vmatprep.subr.mxu1 %v4832_v25  ;;  %3406 = vmatprep.subr.bf16.mxu0 %v4682_v56  ;;  %v1150_v16 = vand.u32 4294901760, %v4713_v55  ;;  %v4850_v4 = vsub.f32 %v265_v13, %v4800_v23  ;;  %v3505_v12 = vpack.c.bf16 %v1144_v51, %v1132_v59 }
  0xbb   :  { %1034 = vmatpush1.msra.mxu1 %v4820_v6  ;;  %365 = vmatmul.mubr.f32.vlgmr.msra.gmra.mrb[0].mxu0 %v4481_v37  ;;  %v1168_v60 = vand.u32 4294901760, %v1167_v3  ;;  %v469_v43 = vsub.f32 %v4793_v63, %v6063_v40  ;;  %v6059_v0 = vand.u32 4294901760, %v4828_v31  ;;  %v6060_v56 = vand.u32 4294901760, %v4830_v15  ;;  %v6359_v40 = vld [vmem:[#allocation69_spill] sm:$0xff] }
  0xbc   :  { %3408 = vmatpush1.bf16.msra.mxu0 %v4675_v48  ;;  %3502 = vmatprep.subr.bf16.mxu1 %v4684_v58  ;;  %v6323_v13 = vand.u32 4294901760, %v4279_v53  ;;  %v6324_v57 = vand.u32 4294901760, %v4782_v49  ;;  %v4867_v51 = vsub.f32 %v267_v24, %v4832_v25  ;;  %v1162_v3 = vand.u32 4294901760, %v4420_v26 }
  0xbd   :  { %3410 = vmatprep.subr.bf16.mxu0 %v3409_v11  ;;  %1087 = vmatmul.mubr.f32.vlgmr.msra.gmra.mrb[0].mxu1 %v4481_v37  ;;  %v1179_v48 = vsub.f32 %v4807_v47, %v6062_v29  ;;  %v1191_v53 = vsub.f32 %v4798_v44, %v6054_v21  ;;  %v475_v58 = vsub.f32 %v4814_v41, %v6055_v18  ;;  %v6325_v24 = vand.u32 4294901760, %v4816_v33  ;;  %v6358_v29 = vld [vmem:[#allocation66_spill] sm:$0xff] }
  0xbe   :  { %v3413_v55 = vpack.c.bf16 %v446_v32, %v6323_v13  ;;  %v457_v59 = vsub.f32 %v4782_v49, %v6324_v57  ;;  %v4884_v37 = vsub.f32 %v264_v50, %v4822_v30  ;;  %3504 = vmatpush1.bf16.msra.mxu1 %v4708_v9  ;;  %v452_v26 = vand.u32 4294901760, %v451_v61  ;;  %370 = vmatprep.mubr.f32.mxu0 %v6242_v46 }
  0xbf   :  { %v463_v11 = vsub.f32 %v4816_v33, %v6325_v24  ;;  %3506 = vmatprep.subr.bf16.mxu1 %v3505_v12  ;;  %v3507_v32 = vpack.c.bf16 %v1150_v16, %v1138_v54  ;;  %v6326_v13 = vand.u32 4294901760, %v4332_v42  ;;  %v470_v21 = vand.u32 4294901760, %v469_v43  ;;  %376 = vmatmul.mubr.f32.gmra.mrb[2].mxu0 %v4568_v39 }
  0xc0   :  { %v6061_v18 = vand.u32 4294901760, %v4850_v4  ;;  %v1197_v50 = vsub.f32 %v4828_v31, %v6059_v0  ;;  %v1185_v9 = vsub.f32 %v4830_v15, %v6060_v56  ;;  %v4899_v61 = vsub.f32 %v266_v35, %v4820_v6  ;;  %3412 = vmatpush1.bf16.msra.mxu0 %v3411_v28  ;;  %1092 = vmatprep.mubr.f32.mxu1 %v6242_v46  ;;  %v6354_v0 = vld [vmem:[#allocation59_spill] sm:$0xff] }
  0xc1   :  { %v3509_v57 = vpack.c.bf16 %v1168_v60, %v6326_v13  ;;  %v1174_v42 = vand.u32 4294901760, %v4778_v19  ;;  %3414 = vmatprep.subr.bf16.mxu0 %v3413_v55  ;;  %v458_v54 = vand.u32 4294901760, %v457_v59  ;;  %v1180_v16 = vand.u32 4294901760, %v1179_v48  ;;  %1098 = vmatmul.mubr.f32.gmra.mrb[2].mxu1 %v4568_v39  ;;  %v6356_v56 = vld [vmem:[#allocation63_spill] sm:$0xff] }
  0xc2   :  { %v1192_v12 = vand.u32 4294901760, %v1191_v53  ;;  %v6058_v60 = vand.u32 4294901760, %v4867_v51  ;;  %v6057_v43 = vand.u32 4294901760, %v4884_v37  ;;  %3508 = vmatpush1.bf16.msra.mxu1 %v3507_v32  ;;  %v6327_v24 = vand.u32 4294901760, %v4373_v17  ;;  %536 = vmatprep.mubr.f32.mxu0 %v6242_v46 }
  0xc3   :  { %v464_v13 = vand.u32 4294901760, %v463_v11  ;;  %v476_v28 = vand.u32 4294901760, %v475_v58  ;;  %3510 = vmatprep.subr.bf16.mxu1 %v3509_v57  ;;  %v3417_v19 = vpack.c.bf16 %v470_v21, %v458_v54  ;;  %v481_v55 = vsub.f32 %v4850_v4, %v6061_v18  ;;  %1258 = vmatprep.mubr.f32.mxu1 %v6242_v46  ;;  %v6357_v18 = vld [vmem:[#allocation68_spill] sm:$0xff] }
  0xc4   :  { %v3415_v35 = vpack.c.bf16 %v452_v26, %v6327_v24  ;;  %v6056_v39 = vand.u32 4294901760, %v4899_v61  ;;  %v3511_v59 = vpack.c.bf16 %v1174_v42, %v1162_v3  ;;  %v1186_v48 = vand.u32 4294901760, %v1185_v9  ;;  %v6328_v9 = vld [vmem:[#allocation41_spill] sm:$0xff]  ;;  %v6329_v42 = vld [vmem:[#allocation50_spill] sm:$0xff] }
  0xc5   :  { %v1198_v53 = vand.u32 4294901760, %v1197_v50  ;;  %v3513_v17 = vpack.c.bf16 %v1192_v12, %v1180_v16  ;;  %v1203_v58 = vsub.f32 %v4867_v51, %v6058_v60  ;;  %v3419_v21 = vpack.c.bf16 %v476_v28, %v464_v13  ;;  %v6330_v12 = vld [vmem:[#allocation48_spill] sm:$0xff]  ;;  %v6331_v24 = vld [vmem:[#allocation42_spill] sm:$0xff]  ;;  %v6332_v13 = vld [vmem:[#allocation29_spill] sm:$0xff] }
  0xc6   :  { %3416 = vmatpush1.bf16.msra.mxu0 %v3415_v35  ;;  %3512 = vmatpush1.bf16.msra.mxu1 %v3511_v59  ;;  %v487_v11 = vsub.f32 %v4884_v37, %v6057_v43  ;;  %v482_v26 = vand.u32 4294901760, %v481_v55  ;;  %v1209_v3 = vsub.f32 %v4899_v61, %v6056_v39  ;;  %v3421_v54 = vpack.c.bf16 %v6329_v42, %v6328_v9  ;;  %v6333_v28 = vld [vmem:[#allocation56_spill] sm:$0xff]  ;;  %v6334_v59 = vld [vmem:[#allocation55_spill] sm:$0xff]  ;;  %v6351_v39 = vld [vmem:[#allocation58_spill] sm:$0xff] }
  0xc7   :  { %3418 = vmatprep.subr.bf16.mxu0 %v3417_v19  ;;  %3514 = vmatprep.subr.bf16.mxu1 %v3513_v17  ;;  %v3515_v32 = vpack.c.bf16 %v1198_v53, %v1186_v48  ;;  %v1204_v57 = vand.u32 4294901760, %v1203_v58  ;;  %v3423_v35 = vpack.c.bf16 %v6331_v24, %v6330_v12  ;;  %v3517_v19 = vpack.c.bf16 %v4513_v1, %v6333_v28  ;;  %v6335_v17 = vld [vmem:[#allocation60_spill] sm:$0xff]  ;;  %v6352_v43 = vld [vmem:[#allocation57_spill] sm:$0xff] }
  0xc8   :  { %v488_v50 = vand.u32 4294901760, %v487_v11  ;;  %v1210_v16 = vand.u32 4294901760, %v1209_v3  ;;  %v3425_v55 = vpack.c.bf16 %v4602_v27, %v4556_v52  ;;  %v3519_v48 = vpack.c.bf16 %v6334_v59, %v4538_v34  ;;  %v6339_v3 = vld [vmem:[#allocation62_spill] sm:$0xff]  ;;  %v6353_v60 = vld [vmem:[#allocation61_spill] sm:$0xff] }
  0xc9   :  { %v3521_v53 = vpack.c.bf16 %v4695_v20, %v4670_v45  ;;  %v3427_v58 = vpack.c.bf16 %v6335_v17, %v4627_v14  ;;  %v6361_v62 = vand.u32 4294901760, %v6329_v42  ;;  %v6362_v10 = vand.u32 4294901760, %v6330_v12 }
  0xca   :  { %3420 = vmatpush1.bf16.msra.mxu0 %v3419_v21  ;;  %3516 = vmatpush1.bf16.msra.mxu1 %v3515_v32  ;;  %v6336_v21 = vld [vmem:[#allocation19_spill] sm:$0xff]  ;;  %v6338_v32 = vld [vmem:[#allocation64_spill] sm:$0xff]  ;;  %v6363_v8 = vand.u32 4294901760, %v6331_v24  ;;  %v6368_v42 = vand.u32 4294901760, %v4513_v1  ;;  %v6373_v1 = vand.u32 4294901760, %v4627_v14 }
  0xcb   :  { %483 = vmatprep.subr.mxu0 %v482_v26  ;;  %1205 = vmatprep.subr.mxu1 %v1204_v57  ;;  %v3429_v11 = vpack.c.bf16 %v4734_v38, %v6336_v21  ;;  %v6337_v26 = vld [vmem:[#allocation35_spill] sm:$0xff]  ;;  %v3523_v57 = vpack.c.bf16 %v6339_v3, %v6338_v32  ;;  %v6375_v12 = vand.u32 4294901760, %v6336_v21  ;;  %v6383_v21 = vand.u32 4294901760, %v4738_v7 }
  0xce   :  { %489 = vmatpush1.msra.mxu0 %v488_v50  ;;  %1211 = vmatpush1.msra.mxu1 %v1210_v16  ;;  %v6340_v50 = vld [vmem:[#allocation26_spill] sm:$0xff]  ;;  %v6341_v16 = vld [vmem:[#allocation27_spill] sm:$0xff] }
  0xcf   :  { %3422 = vmatprep.subr.bf16.mxu0 %v3421_v54  ;;  %538 = vmatmul.mubr.f32.vlgmr.msra.gmra.mrb[0].mxu0 %v6332_v13  ;;  %v3525_v54 = vpack.c.bf16 %v4767_v36, %v6340_v50  ;;  %v6380_v14 = vand.u32 4294901760, %v6340_v50 }
  0xd0   :  { %3424 = vmatpush1.bf16.msra.mxu0 %v3423_v35  ;;  %3518 = vmatprep.subr.bf16.mxu1 %v3517_v19  ;;  %v3431_v35 = vpack.c.bf16 %v4738_v7, %v6341_v16  ;;  %v3433_v19 = vpack.c.bf16 %v4793_v63, %v4782_v49 }
  0xd1   :  { %3426 = vmatprep.subr.bf16.mxu0 %v3425_v55  ;;  %1260 = vmatmul.mubr.f32.vlgmr.msra.gmra.mrb[0].mxu1 %v6332_v13  ;;  %v6342_v55 = vld [vmem:[#allocation28_spill] sm:$0xff] }
  0xd2   :  { %543 = vmatprep.mubr.f32.mxu0 %v6242_v46  ;;  %3520 = vmatpush1.bf16.msra.mxu1 %v3519_v48  ;;  %v6343_v48 = vld [vmem:[#allocation67_spill] sm:$0xff] }
  0xd3   :  { %545 = vmatmul.mubr.f32.gmra.mrb[2].mxu0 %v6337_v26  ;;  %3522 = vmatprep.subr.bf16.mxu1 %v3521_v53  ;;  %v3527_v53 = vpack.c.bf16 %v6343_v48, %v6342_v55  ;;  %v6387_v7 = vand.u32 4294901760, %v6343_v48  ;;  %v6394_v48 = vand.u32 4294901760, %v4828_v31 }
  0xd4   :  { %3428 = vmatpush1.bf16.msra.mxu0 %v3427_v58  ;;  %1265 = vmatprep.mubr.f32.mxu1 %v6242_v46  ;;  %v3529_v58 = vpack.c.bf16 %v4798_v44, %v4807_v47 }
  0xd5   :  { %3430 = vmatprep.subr.bf16.mxu0 %v3429_v11  ;;  %1267 = vmatmul.mubr.f32.gmra.mrb[2].mxu1 %v6337_v26  ;;  %v3435_v11 = vpack.c.bf16 %v4814_v41, %v4816_v33 }
  0xd6   :  { %651 = vmatprep.mubr.f32.mxu0 %v6242_v46  ;;  %3524 = vmatpush1.bf16.msra.mxu1 %v3523_v57  ;;  %v3531_v57 = vpack.c.bf16 %v4828_v31, %v4830_v15  ;;  %v6399_v31 = vld [vmem:[#allocation69_spill] sm:$0xff] }
  0xd7   :  { %1373 = vmatprep.mubr.f32.mxu1 %v6242_v46  ;;  %3526 = vmatprep.subr.bf16.mxu1 %v3525_v54  ;;  %v6344_v54 = vld [vmem:[#allocation33_spill] sm:$0xff] }
  0xd8   :  { %3432 = vmatpush1.bf16.msra.mxu0 %v3431_v35  ;;  %v6345_v35 = vld [vmem:[#allocation34_spill] sm:$0xff] }
  0xd9   :  { %3434 = vmatprep.subr.bf16.mxu0 %v3433_v19  ;;  %v6346_v19 = vld [vmem:[#allocation36_spill] sm:$0xff] }
  0xda   :  { %3528 = vmatpush1.bf16.msra.mxu1 %v3527_v53  ;;  %v6347_v53 = vld [vmem:[#allocation54_spill] sm:$0xff] }
  0xdb   :  { %3530 = vmatprep.subr.bf16.mxu1 %v3529_v58  ;;  %v6348_v58 = vld [vmem:[#allocation43_spill] sm:$0xff] }
  0xdc   :  { %3436 = vmatpush1.bf16.msra.mxu0 %v3435_v11  ;;  %v6349_v11 = vld [vmem:[#allocation45_spill] sm:$0xff] }
  0xdd   :  { %601 = vmatprep.subr.mxu0 %v4850_v4 }
  0xde   :  { %3532 = vmatpush1.bf16.msra.mxu1 %v3531_v57  ;;  %v6350_v57 = vld [vmem:[#allocation38_spill] sm:$0xff] }
  0xdf   :  { %1323 = vmatprep.subr.mxu1 %v4867_v51 }
  0xe0   :  { %604 = vmatpush1.msra.mxu0 %v4884_v37 }
  0xe1   :  { %3438 = vmatprep.subr.bf16.mxu0 %v6344_v54  ;;  %654 = vmatmul.mubr.f32.vlgmr.msra.gmra.mrb[0].mxu0 %v6345_v35 }
  0xe2   :  { %3440 = vmatpush1.bf16.msra.mxu0 %v6346_v19  ;;  %659 = vmatprep.mubr.f32.mxu0 %v6242_v46 }
  0xe3   :  { %1326 = vmatpush1.msra.mxu1 %v4899_v61  ;;  %3442 = vmatprep.subr.bf16.mxu0 %v6347_v53 }
  0xe4   :  { %3534 = vmatprep.subr.bf16.mxu1 %v6348_v58  ;;  %1376 = vmatmul.mubr.f32.vlgmr.msra.gmra.mrb[0].mxu1 %v6345_v35  ;;  %v6355_v35 = vld [vmem:[#allocation65_spill] sm:$0xff] }
  0xe5   :  { %3536 = vmatpush1.bf16.msra.mxu1 %v6349_v11  ;;  %662 = vmatmul.mubr.f32.gmra.mrb[2].mxu0 %v6350_v57 }
  0xe6   :  { %3538 = vmatprep.subr.bf16.mxu1 %v6351_v39  ;;  %3444 = vmatpush1.bf16.msra.mxu0 %v6352_v43 }
  0xe7   :  { %3446 = vmatprep.subr.bf16.mxu0 %v6353_v60  ;;  %1381 = vmatprep.mubr.f32.mxu1 %v6242_v46 }
  0xe8   :  { %1384 = vmatmul.mubr.f32.gmra.mrb[2].mxu1 %v6350_v57  ;;  %750 = vmatprep.mubr.f32.mxu0 %v6242_v46  ;;  %v6360_v57 = vand.u32 4294901760, %v6328_v9 }
  0xe9   :  { %3540 = vmatpush1.bf16.msra.mxu1 %v6354_v0  ;;  %1472 = vmatprep.mubr.f32.mxu1 %v6242_v46 }
  0xea   :  { %3542 = vmatprep.subr.bf16.mxu1 %v6355_v35  ;;  %3448 = vmatpush1.bf16.msra.mxu0 %v6356_v56  ;;  %v3453_v22 = vpack.c.bf16 %v6361_v62, %v6360_v57  ;;  %v6367_v62 = vand.u32 4294901760, %v6333_v28  ;;  %v6377_v28 = vld [vmem:[#allocation47_spill] sm:$0xff] }
  0xeb   :  { %3450 = vmatprep.subr.bf16.mxu0 %v6357_v18 }
  0xec   :  { %v3549_v57 = vpack.c.bf16 %v6368_v42, %v6367_v62  ;;  %v6389_v42 = vand.u32 4294901760, %v4798_v44  ;;  %v6395_v44 = vand.u32 4294901760, %v4867_v51 }
  0xed   :  { %3544 = vmatpush1.bf16.msra.mxu1 %v6358_v29 }
  0xee   :  { %3546 = vmatprep.subr.bf16.mxu1 %v4786_v2  ;;  %3452 = vmatpush1.bf16.msra.mxu0 %v6359_v40  ;;  %v3455_v2 = vpack.c.bf16 %v6363_v8, %v6362_v10  ;;  %v6364_v40 = vld [vmem:[#allocation37_spill] sm:$0xff]  ;;  %v6369_v8 = vand.u32 4294901760, %v4538_v34  ;;  %v6376_v34 = vand.u32 4294901760, %v4734_v38  ;;  %v6382_v38 = vand.u32 4294901760, %v6341_v16 }
  0xef   :  { %701 = vmatprep.subr.mxu0 %v4800_v23  ;;  %v6365_v23 = vand.u32 4294901760, %v4556_v52  ;;  %v6371_v52 = vand.u32 4294901760, %v4670_v45  ;;  %v6378_v45 = vand.u32 4294901760, %v6338_v32  ;;  %v6384_v32 = vand.u32 4294901760, %v4782_v49 }
  0xf0   :  { %v3461_v24 = vpack.c.bf16 %v6376_v34, %v6375_v12  ;;  %v6388_v16 = vand.u32 4294901760, %v4807_v47  ;;  %v6390_v49 = vand.u32 4294901760, %v4816_v33  ;;  %v6396_v33 = vand.u32 4294901760, %v4884_v37 }
  0xf1   :  { %3548 = vmatpush1.bf16.msra.mxu1 %v4795_v5  ;;  %v6366_v5 = vand.u32 4294901760, %v4602_v27  ;;  %v6397_v47 = vand.u32 4294901760, %v4899_v61  ;;  %v3871_v34 = vmov 0  }
  0xf2   :  { %1423 = vmatprep.subr.mxu1 %v4832_v25  ;;  %703 = vmatpush1.msra.mxu0 %v4822_v30 }
  0xf3   :  { %3454 = vmatprep.subr.bf16.mxu0 %v3453_v22  ;;  %754 = vmatmul.mubr.f32.vlgmr.msra.gmra.mrb[0].mxu0 %v6364_v40  ;;  %v3457_v9 = vpack.c.bf16 %v6366_v5, %v6365_v23  ;;  %v6370_v22 = vand.u32 4294901760, %v6334_v59  ;;  %v6372_v5 = vand.u32 4294901760, %v4695_v20  ;;  %v6379_v20 = vand.u32 4294901760, %v6339_v3 }
  0xf4   :  { %3456 = vmatpush1.bf16.msra.mxu0 %v3455_v2  ;;  %759 = vmatprep.mubr.f32.mxu0 %v6242_v46  ;;  %v6374_v2 = vand.u32 4294901760, %v6335_v17  ;;  %v6381_v59 = vand.u32 4294901760, %v4767_v36  ;;  %v6385_v3 = vand.u32 4294901760, %v4793_v63  ;;  %v6386_v36 = vand.u32 4294901760, %v6342_v55 }
  0xf5   :  { %1425 = vmatpush1.msra.mxu1 %v4820_v6  ;;  %3458 = vmatprep.subr.bf16.mxu0 %v3457_v9  ;;  %v3551_v10 = vpack.c.bf16 %v6370_v22, %v6369_v8  ;;  %v3553_v27 = vpack.c.bf16 %v6372_v5, %v6371_v52  ;;  %v3463_v9 = vpack.c.bf16 %v6383_v21, %v6382_v38  ;;  %v6391_v63 = vand.u32 4294901760, %v4814_v41  ;;  %v6398_v41 = vld [vmem:[#allocation70_spill] sm:$0xff] }
  0xf6   :  { %3550 = vmatprep.subr.bf16.mxu1 %v3549_v57  ;;  %1476 = vmatmul.mubr.f32.vlgmr.msra.gmra.mrb[0].mxu1 %v6364_v40  ;;  %v3459_v23 = vpack.c.bf16 %v6374_v2, %v6373_v1  ;;  %v3555_v40 = vpack.c.bf16 %v6379_v20, %v6378_v45  ;;  %v3557_v17 = vpack.c.bf16 %v6381_v59, %v6380_v14  ;;  %v6392_v22 = vand.u32 4294901760, %v4850_v4  ;;  %v6401_v4 = vld [vmem:[#allocation71_spill] sm:$0xff]  ;;  %v131_v21 = vld [vmem:[%s5938_s2] sm:$0xff] }
  0xf7   :  { %3552 = vmatpush1.bf16.msra.mxu1 %v3551_v10  ;;  %763 = vmatmul.mubr.f32.gmra.mrb[2].mxu0 %v6377_v28  ;;  %v3465_v62 = vpack.c.bf16 %v6385_v3, %v6384_v32  ;;  %v3559_v50 = vpack.c.bf16 %v6387_v7, %v6386_v36  ;;  %v3561_v57 = vpack.c.bf16 %v6389_v42, %v6388_v16  ;;  %v6393_v55 = vand.u32 4294901760, %v4830_v15  ;;  %v6400_v15 = vld [vmem:[#allocation72_spill] sm:$0xff] }
  0xf8   :  { %3554 = vmatprep.subr.bf16.mxu1 %v3553_v27  ;;  %3460 = vmatpush1.bf16.msra.mxu0 %v3459_v23  ;;  %v3467_v8 = vpack.c.bf16 %v6391_v63, %v6390_v49  ;;  %v3872_v38 = vmov 1  }
  0xf9   :  { %3462 = vmatprep.subr.bf16.mxu0 %v3461_v24  ;;  %1481 = vmatprep.mubr.f32.mxu1 %v6242_v46  ;;  %v3563_v10 = vpack.c.bf16 %v6394_v48, %v6393_v55 }
  0xfa   :  { %1485 = vmatmul.mubr.f32.gmra.mrb[2].mxu1 %v6377_v28  ;;  %887 = vmatprep.mubr.f32.mxu0 %v6242_v46 }
  0xfb   :  { %3556 = vmatpush1.bf16.msra.mxu1 %v3555_v40  ;;  %1609 = vmatprep.mubr.f32.mxu1 %v6242_v46 }
  0xfc   :  { %3558 = vmatprep.subr.bf16.mxu1 %v3557_v17  ;;  %3464 = vmatpush1.bf16.msra.mxu0 %v3463_v9 }
  0xfd   :  { %3466 = vmatprep.subr.bf16.mxu0 %v3465_v62  ;;  %3848 = vset.pattern.permute.xlu1 %v3871_v34 }
  0xfe   :  { %3849 = vset.pattern.permute.xlu0 %v3872_v38 }
  0xff   :  { %3560 = vmatpush1.bf16.msra.mxu1 %v3559_v50 }
 0x100   :  { %3562 = vmatprep.subr.bf16.mxu1 %v3561_v57  ;;  %3468 = vmatpush1.bf16.msra.mxu0 %v3467_v8 }
 0x101   :  { %836 = vmatprep.subr.mxu0 %v6392_v22 }
 0x103   :  { %3564 = vmatpush1.bf16.msra.mxu1 %v3563_v10 }
 0x104   :  { %1558 = vmatprep.subr.mxu1 %v6395_v44  ;;  %840 = vmatpush1.msra.mxu0 %v6396_v33 }
 0x105   :  { %3470 = vmatprep.subr.bf16.mxu0 %v6344_v54  ;;  %889 = vmatmul.mubr.f32.vlgmr.msra.gmra.mrb[0].mxu0 %v6332_v13 }
 0x106   :  { %3472 = vmatpush1.bf16.msra.mxu0 %v6346_v19  ;;  %894 = vmatprep.mubr.f32.mxu0 %v6242_v46 }
 0x107   :  { %1562 = vmatpush1.msra.mxu1 %v6397_v47  ;;  %3474 = vmatprep.subr.bf16.mxu0 %v6347_v53 }
 0x108   :  { %3566 = vmatprep.subr.bf16.mxu1 %v6348_v58  ;;  %1611 = vmatmul.mubr.f32.vlgmr.msra.gmra.mrb[0].mxu1 %v6332_v13 }
 0x109   :  { %3568 = vmatpush1.bf16.msra.mxu1 %v6349_v11  ;;  %896 = vmatmul.mubr.f32.gmra.mrb[2].mxu0 %v6337_v26 }
 0x10a   :  { %3570 = vmatprep.subr.bf16.mxu1 %v6351_v39  ;;  %3476 = vmatpush1.bf16.msra.mxu0 %v6352_v43 }
 0x10b   :  { %3478 = vmatprep.subr.bf16.mxu0 %v6353_v60  ;;  %1616 = vmatprep.mubr.f32.mxu1 %v6242_v46 }
 0x10c   :  { %1618 = vmatmul.mubr.f32.gmra.mrb[2].mxu1 %v6337_v26  ;;  %984 = vmatprep.mubr.f32.mxu0 %v6242_v46 }
 0x10d   :  { %3572 = vmatpush1.bf16.msra.mxu1 %v6354_v0  ;;  %1706 = vmatprep.mubr.f32.mxu1 %v6242_v46 }
 0x10e   :  { %3574 = vmatprep.subr.bf16.mxu1 %v6355_v35  ;;  %3480 = vmatpush1.bf16.msra.mxu0 %v6356_v56 }
 0x10f   :  { %3482 = vmatprep.subr.bf16.mxu0 %v6357_v18 }
 0x111   :  { %3576 = vmatpush1.bf16.msra.mxu1 %v6358_v29 }
 0x112   :  { %3578 = vmatprep.subr.bf16.mxu1 %v6398_v41  ;;  %3484 = vmatpush1.bf16.msra.mxu0 %v6399_v31 }
 0x113   :  { %935 = vmatprep.subr.mxu0 %v6400_v15 }
 0x115   :  { %3580 = vmatpush1.bf16.msra.mxu1 %v6401_v4  ;;  %v6406_v4 = vld [vmem:[#allocation3_spill] sm:$0xff] }
 0x116   :  { %1657 = vmatprep.subr.mxu1 %v4832_v25  ;;  %937 = vmatpush1.msra.mxu0 %v4822_v30  ;;  %vm6410_vm3 = vcmp.lt.s32.totalorder %v6406_v4, 16 }
 0x117   :  { %986 = vmatmul.mubr.f32.vlgmr.msra.gmra.mrb[0].mxu0 %v6332_v13  ;;  %vm6417_vm6 = vmmov %vm6410_vm3 }
 0x118   :  { %991 = vmatprep.mubr.f32.mxu0 %v6242_v46  ;;  %vm6425_vm9 = vmmov %vm6410_vm3 }
 0x119   :  { %1659 = vmatpush1.msra.mxu1 %v4820_v6  ;;  %vm6426_vm5 = vmmov %vm6410_vm3 }
 0x11a   :  { %1708 = vmatmul.mubr.f32.vlgmr.msra.gmra.mrb[0].mxu1 %v6332_v13 }
 0x11b   :  { %993 = vmatmul.mubr.f32.gmra.mrb[2].mxu0 %v6337_v26  ;;  %1713 = vmatprep.mubr.f32.mxu1 %v6242_v46 }
 0x11c   :  { %2031 = vmatprep.mubr.f32.mxu0 %v6242_v46 }
 0x11e   :  { %1715 = vmatmul.mubr.f32.gmra.mrb[2].mxu1 %v6337_v26 }
 0x11f   :  { %2704 = vmatprep.mubr.f32.mxu1 %v6242_v46 }
 0x1ea   :  { %v987_v25 = vpop.f32.mrb[0].mxu0 }
 0x1eb   :  { %v1727_v30 = vmul.f32 %v987_v25, %v987_v25  ;;  %v989_v29 = vpop.f32.mrb[1].mxu0 }
 0x1ec   :  { %v1721_v18 = vadd.f32 %v989_v29, %v987_v25  ;;  %v1728_v0 = vmul.f32 %v989_v29, %v989_v29 }
 0x1ed   :  { %v1709_v56 = vpop.f32.mrb[0].mxu1 }
 0x1ee   :  { %v1729_v51 = vmul.f32 %v1709_v56, %v1709_v56  ;;  %v1711_v6 = vpop.f32.mrb[1].mxu1  ;;  %v5111_v37 = vpop.f32.mrb[2].mxu0  ;;  %v1722_v61 = vadd.f32 %v1721_v18, %v1709_v56  ;;  %v1731_v60 = vadd.f32 %v1728_v0, %v1727_v30  ;;  %v6409_v0 = vld [vmem:[#allocation7_spill] sm:$0xff] }
 0x1ef   :  { %6402 = vst [vmem:[#allocation41_spill] sm:$0xff] %v5111_v37  ;;  %v1777_v43 = vmul.f32 %v5111_v37, %v5111_v37  ;;  %v5115_v39 = vpop.f32.mrb[3].mxu0  ;;  %v1730_v13 = vmul.f32 %v1711_v6, %v1711_v6 }
 0x1f0   :  { %6403 = vst [vmem:[#allocation50_spill] sm:$0xff] %v5115_v39  ;;  %v1771_v26 = vadd.f32 %v5115_v39, %v5111_v37  ;;  %v1778_v54 = vmul.f32 %v5115_v39, %v5115_v39  ;;  %v1723_v19 = vadd.f32 %v1722_v61, %v1711_v6  ;;  %v1732_v53 = vadd.f32 %v1731_v60, %v1729_v51 }
 0x1f1   :  { %v5121_v58 = vpop.f32.mrb[2].mxu1 }
 0x1f2   :  { %6404 = vst [vmem:[#allocation48_spill] sm:$0xff] %v5121_v58  ;;  %v1779_v11 = vmul.f32 %v5121_v58, %v5121_v58  ;;  %v5125_v35 = vpop.f32.mrb[3].mxu1  ;;  %1724 = vadd.xlane.f32.xlu0 %v1723_v19  ;;  %v1733_v52 = vadd.f32 %v1732_v53, %v1730_v13  ;;  %v1772_v5 = vadd.f32 %v1771_v26, %v5121_v58  ;;  %v6411_v26 = vld [vmem:[#allocation2_spill] sm:$0xff]  ;;  %v6412_v19 = vld [vmem:[#allocation4_spill] sm:$0xff] }
 0x1f3   :  { %6405 = vst [vmem:[#allocation42_spill] sm:$0xff] %v5125_v35  ;;  %v1781_v27 = vadd.f32 %v1778_v54, %v1777_v43  ;;  %v1780_v2 = vmul.f32 %v5125_v35, %v5125_v35  ;;  %v5225_v54 = vand.u32 4294901760, %v6411_v26 }
 0x1f4   :  { %1734 = vadd.xlane.f32.xlu1 %v1733_v52  ;;  %v5129_v1 = vadd.f32 %v1772_v5, %v5125_v35  ;;  %v6442_v35 = vld [vmem:[#allocation16_spill] sm:$0xff] }
 0x1f5   :  { %v1782_v23 = vadd.f32 %v1781_v27, %v1779_v11 }
 0x1f7   :  { %v5133_v12 = vadd.f32 %v1782_v23, %v1780_v2 }
 0x27f   :  { %v1725_v24 = vpop.xlane.xlu0 %1724 }
 0x280   :  { %v1726_v28 = vmul.f32 0.001953125, %v1725_v24 }
 0x281   :  { %v1735_v45 = vpop.xlane.xlu1 %1734 }
 0x282   :  { %v1737_v20 = vmul.f32 %v1726_v28, %v1726_v28  ;;  %v1736_v40 = vmul.f32 0.001953125, %v1735_v45  ;;  %v6418_v45 = vld [vmem:[#allocation5_spill] sm:$0xff] }
 0x284   :  { %v1738_v14 = vsub.f32 %v1736_v40, %v1737_v20 }
 0x286   :  { %v1739_v59 = vmax.f32 %v1738_v14, 0.0  ;;  %v5255_v14 = vsub.f32 %v6411_v26, %v5225_v54 }
 0x288   :  { %v1740_v17 = vadd.f32 1e-05, %v1739_v59  ;;  %6420 = vst [vmem:[#allocation60_spill] sm:$0xff] %v5255_v14 }
 0x28a   :  { %3855 = vrsqrt.f32 %v1740_v17 }
 0x294   :  { %v3856_v9 = vpop.eup %3855 }
 0x295   :  { %v1742_v32 = vmul.f32 %v3856_v9, %v131_v21 }
 0x297   :  { %1745 = vperm.xlu1 %3848, %v1742_v32   ;;  %v1752_v3 = vmul.f32 %v1742_v32, %v1726_v28  ;;  %v6424_v32 = vld [vmem:[#allocation12_spill] sm:$0xff] }
 0x299   :  { %1754 = vrot.lane.b32.xlu0 %v1752_v3, %s3866_s23 }
 0x30b   :  { %v1755_v62 = vpop.permute.xlu0 %1754 }
 0x30c   :  { %v1757_v36 = vsub.f32 %v131_v21, %v1755_v62  ;;  %v6423_v21 = vld [vmem:[#allocation11_spill] sm:$0xff] }
 0x30e   :  { %1760 = vperm.xlu0 %3849, %v1757_v36  }
 0x316   :  { %v1746_v7 = vpop.permute.xlu1 %1745 }
 0x317   :  { %v1748_v50 = vmul.f32 %v1746_v7, %v987_v25  ;;  %v1749_v42 = vmul.f32 %v1746_v7, %v989_v29  ;;  %v1751_v57 = vmul.f32 %v1746_v7, %v1711_v6  ;;  %v1750_v55 = vmul.f32 %v1746_v7, %v1709_v56  ;;  %v6408_v29 = vld [vmem:[#allocation6_spill] sm:$0xff] }
 0x38d   :  { %v1761_v16 = vpop.permute.xlu0 %1760 }
 0x38e   :  { %v1763_v49 = vadd.f32 %v1761_v16, %v1748_v50  ;;  %v1764_v63 = vadd.f32 %v1761_v16, %v1749_v42  ;;  %v1766_v8 = vadd.f32 %v1761_v16, %v1751_v57  ;;  %v1765_v48 = vadd.f32 %v1761_v16, %v1750_v55 }
 0x390   :  { %v5139_v22 = vmax.f32 %v1763_v49, 0.0  ;;  %v5145_v10 = vmax.f32 %v1764_v63, 0.0  ;;  %v5147_v44 = vmax.f32 %v1766_v8, 0.0  ;;  %v5153_v33 = vmax.f32 %v1765_v48, 0.0  ;;  %v6428_v63 = vld [vmem:[#allocation8_spill] sm:$0xff] }
 0x392   :  { %1834 = vrot.lane.b32.xlu0 %v5139_v22, %s3863_s14  ;;  %1818 = vrot.lane.b32.xlu1 %v5139_v22, %s3864_s15  ;;  %v6080_v61 = vand.u32 4294901760, %v5139_v22  ;;  %v6081_v60 = vand.u32 4294901760, %v5145_v10  ;;  %v6077_v13 = vand.u32 4294901760, %v5147_v44  ;;  %v6079_v11 = vand.u32 4294901760, %v5153_v33 }
 0x394   :  { %v5232_v2 = vsub.f32 %v5139_v22, %v6080_v61  ;;  %v5237_v23 = vsub.f32 %v5145_v10, %v6081_v60  ;;  %v5251_v40 = vsub.f32 %v5147_v44, %v6077_v13  ;;  %v5262_v17 = vsub.f32 %v5153_v33, %v6079_v11 }
 0x396   :  { %1824 = vrot.lane.b32.xlu0 %v5147_v44, %s3864_s15  ;;  %1820 = vrot.lane.b32.xlu1 %v5145_v10, %s3864_s15  ;;  %6413 = vst [vmem:[#allocation29_spill] sm:$0xff] %v5232_v2  ;;  %6414 = vst [vmem:[#allocation56_spill] sm:$0xff] %v5237_v23  ;;  %v6075_v42 = vand.u32 4294901760, %v5237_v23  ;;  %v6074_v57 = vand.u32 4294901760, %v5232_v2  ;;  %v6073_v55 = vand.u32 4294901760, %v5251_v40 }
 0x397   :  { %6419 = vst [vmem:[#allocation55_spill] sm:$0xff] %v5251_v40  ;;  %6422 = vst [vmem:[#allocation35_spill] sm:$0xff] %v5262_v17 }
 0x39a   :  { %1822 = vrot.lane.b32.xlu0 %v5153_v33, %s3864_s15  ;;  %1836 = vrot.lane.b32.xlu1 %v5145_v10, %s3863_s14 }
 0x39e   :  { %1850 = vrot.lane.b32.xlu0 %v5139_v22, %s3865_s22  ;;  %1840 = vrot.lane.b32.xlu1 %v5147_v44, %s3863_s14 }
 0x3a2   :  { %1866 = vrot.lane.b32.xlu0 %v5139_v22, %s3866_s23  ;;  %1838 = vrot.lane.b32.xlu1 %v5153_v33, %s3863_s14 }
 0x3a6   :  { %1856 = vrot.lane.b32.xlu0 %v5147_v44, %s3865_s22  ;;  %1852 = vrot.lane.b32.xlu1 %v5145_v10, %s3865_s22 }
 0x3aa   :  { %1854 = vrot.lane.b32.xlu0 %v5153_v33, %s3865_s22  ;;  %1868 = vrot.lane.b32.xlu1 %v5145_v10, %s3866_s23 }
 0x3ae   :  { %1884 = vrot.lane.b32.xlu0 %v5145_v10, %s3867_s0  ;;  %1872 = vrot.lane.b32.xlu1 %v5147_v44, %s3866_s23 }
 0x3b2   :  { %1882 = vrot.lane.b32.xlu0 %v5139_v22, %s3867_s0  ;;  %1870 = vrot.lane.b32.xlu1 %v5153_v33, %s3866_s23 }
 0x3b6   :  { %1900 = vrot.lane.b32.xlu0 %v5145_v10, %s3868_s24  ;;  %1886 = vrot.lane.b32.xlu1 %v5153_v33, %s3867_s0 }
 0x3ba   :  { %1916 = vrot.lane.b32.xlu0 %v5145_v10, %s3869_s25  ;;  %1888 = vrot.lane.b32.xlu1 %v5147_v44, %s3867_s0 }
 0x3be   :  { %1898 = vrot.lane.b32.xlu0 %v5139_v22, %s3868_s24  ;;  %1902 = vrot.lane.b32.xlu1 %v5153_v33, %s3868_s24 }
 0x3c2   :  { %1904 = vrot.lane.b32.xlu0 %v5147_v44, %s3868_s24  ;;  %1918 = vrot.lane.b32.xlu1 %v5153_v33, %s3869_s25 }
 0x3c6   :  { %1932 = vrot.lane.b32.xlu0 %v5145_v10, %s3870_s28  ;;  %1914 = vrot.lane.b32.xlu1 %v5139_v22, %s3869_s25 }
 0x3ca   :  { %1930 = vrot.lane.b32.xlu0 %v5139_v22, %s3870_s28  ;;  %1920 = vrot.lane.b32.xlu1 %v5147_v44, %s3869_s25 }
 0x3ce   :  { %1934 = vrot.lane.b32.xlu1 %v5153_v33, %s3870_s28 }
 0x3d2   :  { %1936 = vrot.lane.b32.xlu1 %v5147_v44, %s3870_s28 }
 0x3e9   :  { %1774 = vadd.xlane.f32.xlu0 %v5129_v1 }
 0x3ed   :  { %1784 = vadd.xlane.f32.xlu0 %v5133_v12 }
 0x404   :  { %v1835_v47 = vpop.permute.xlu0 %1834  ;;  %v1819_v41 = vpop.permute.xlu1 %1818 }
 0x408   :  { %v1825_v31 = vpop.permute.xlu0 %1824  ;;  %v1821_v15 = vpop.permute.xlu1 %1820 }
 0x409   :  { %v1829_v25 = vsel %vm6407_vm10, %v1825_v31, %v1819_v41  ;;  %v1828_v30 = vsel %vm6232_vm2, %v1819_v41, %v1821_v15 }
 0x40a   :  { %v1830_v18 = vmul.f32 %v6408_v29, %v1829_v25  ;;  %v1831_v56 = vmul.f32 %v6409_v0, %v1828_v30 }
 0x40c   :  { %v1823_v51 = vpop.permute.xlu0 %1822  ;;  %v1837_v6 = vpop.permute.xlu1 %1836  ;;  %v1951_v52 = vand.u32 4294901760, %v1830_v18  ;;  %v1949_v5 = vand.u32 4294901760, %v1831_v56 }
 0x40d   :  { %v1844_v43 = vsel %vm6410_vm3, %v1835_v47, %v1837_v6  ;;  %v1826_v12 = vsel %vm6415_vm11, %v1823_v51, %v1825_v31  ;;  %v1827_v34 = vsel %vm6416_vm7, %v1821_v15, %v1823_v51  ;;  %v5284_v31 = vand.u32 4294901760, %v5255_v14 }
 0x40e   :  { %v1847_v53 = vmul.f32 %v6412_v19, %v1844_v43  ;;  %v5264_v38 = vsub.f32 %v1830_v18, %v1951_v52  ;;  %v1832_v9 = vmul.f32 %v6423_v21, %v1827_v34  ;;  %v1833_v3 = vmul.f32 %v6424_v32, %v1826_v12 }
 0x40f   :  { %v5280_v48 = vsub.f32 %v1831_v56, %v1949_v5  ;;  %6430 = vst [vmem:[#allocation62_spill] sm:$0xff] %v5284_v31  ;;  %v6072_v15 = vand.u32 4294901760, %v5262_v17  ;;  %v5292_v56 = vsub.f32 %v5237_v23, %v6075_v42  ;;  %v5297_v43 = vsub.f32 %v5232_v2, %v6074_v57 }
 0x410   :  { %v1851_v27 = vpop.permute.xlu0 %1850  ;;  %v1841_v1 = vpop.permute.xlu1 %1840  ;;  %v1953_v24 = vand.u32 4294901760, %v1847_v53  ;;  %v6076_v25 = vand.u32 4294901760, %v5264_v38  ;;  %v2622_v30 = vand.u32 4294901760, %v1833_v3  ;;  %v2624_v29 = vand.u32 4294901760, %v1832_v9 }
 0x411   :  { %v1845_v28 = vsel %vm6417_vm6, %v1841_v1, %v1835_v47  ;;  %v6429_v47 = vld [vmem:[#allocation9_spill] sm:$0xff]  ;;  %v6078_v12 = vand.u32 4294901760, %v5280_v48  ;;  %v2035_v34 = vsub.f32 %v5255_v14, %v5284_v31 }
 0x412   :  { %v5246_v20 = vmul.f32 %v6418_v45, %v1845_v28  ;;  %v5257_v59 = vpack.c.bf16 %v1953_v24, %v1949_v5  ;;  %v5299_v26 = vsub.f32 %v1847_v53, %v1953_v24  ;;  %v5308_v5 = vsub.f32 %v5251_v40, %v6073_v55 }
 0x413   :  { %v5318_v53 = vsub.f32 %v5262_v17, %v6072_v15  ;;  %v5323_v24 = vsub.f32 %v5264_v38, %v6076_v25  ;;  %v5325_v28 = vsub.f32 %v1833_v3, %v2622_v30  ;;  %v5327_v45 = vsub.f32 %v1832_v9, %v2624_v29  ;;  %v6435_v15 = vld [vmem:[#allocation10_spill] sm:$0xff] }
 0x414   :  { %6421 = vst [vmem:[#allocation19_spill] sm:$0xff] %v5257_v59  ;;  %v1955_v62 = vand.u32 4294901760, %v5246_v20  ;;  %v1867_v36 = vpop.permute.xlu0 %1866  ;;  %v1839_v7 = vpop.permute.xlu1 %1838  ;;  %3582 = vmatprep.subr.bf16.mxu0 %v5257_v59  ;;  %v5347_v13 = vand.u32 4294901760, %v2035_v34  ;;  %v6436_v34 = vld [vmem:[#allocation13_spill] sm:$0xff] }
 0x415   :  { %v1842_v50 = vsel %vm6425_vm9, %v1839_v7, %v1841_v1  ;;  %v1843_v16 = vsel %vm6426_vm5, %v1837_v6, %v1839_v7  ;;  %v6083_v57 = vand.u32 4294901760, %v5327_v45 }
 0x416   :  { %v5276_v49 = vpack.c.bf16 %v1955_v62, %v1951_v52  ;;  %v1848_v8 = vmul.f32 %v6428_v63, %v1843_v16  ;;  %v1849_v41 = vmul.f32 %v6429_v47, %v1842_v50  ;;  %v6433_v50 = vld [vmem:[#allocation14_spill] sm:$0xff]  ;;  %v6082_v47 = vand.u32 4294901760, %v5299_v26 }
 0x418   :  { %6427 = vst [vmem:[#allocation64_spill] sm:$0xff] %v5276_v49  ;;  %v2628_v18 = vand.u32 4294901760, %v1848_v8  ;;  %v1857_v0 = vpop.permute.xlu0 %1856  ;;  %3584 = vmatpush1.bf16.msra.mxu0 %v5276_v49  ;;  %v1853_v51 = vpop.permute.xlu1 %1852  ;;  %v2626_v6 = vand.u32 4294901760, %v1849_v41  ;;  %v2058_v9 = vsub.f32 %v5299_v26, %v6082_v47 }
 0x419   :  { %v1860_v52 = vsel %vm174_vm4, %v1851_v27, %v1853_v51  ;;  %v1861_v21 = vsel %vm174_vm4, %v1857_v0, %v1851_v27  ;;  %v6434_v27 = vld [vmem:[#allocation15_spill] sm:$0xff] }
 0x41a   :  { %v5301_v19 = vpack.c.bf16 %v2628_v18, %v2624_v29  ;;  %v5310_v1 = vpack.c.bf16 %v2626_v6, %v2622_v30  ;;  %v1863_v16 = vmul.f32 %v6433_v50, %v1860_v52  ;;  %v1862_v29 = vmul.f32 %v6434_v27, %v1861_v21  ;;  %v6439_v30 = vld [vmem:[#allocation18_spill] sm:$0xff] }
 0x41b   :  { %v2046_v52 = vsub.f32 %v5280_v48, %v6078_v12  ;;  %v5356_v27 = vsub.f32 %v5246_v20, %v1955_v62  ;;  %v5364_v11 = vsub.f32 %v1848_v8, %v2628_v18  ;;  %v5371_v20 = vsub.f32 %v5327_v45, %v6083_v57 }
 0x41c   :  { %6431 = vst [vmem:[#allocation26_spill] sm:$0xff] %v5301_v19  ;;  %6432 = vst [vmem:[#allocation27_spill] sm:$0xff] %v5310_v1  ;;  %v1855_v32 = vpop.permute.xlu0 %1854  ;;  %v1869_v7 = vpop.permute.xlu1 %1868  ;;  %3678 = vmatprep.subr.bf16.mxu1 %v5310_v1  ;;  %v1957_v3 = vand.u32 4294901760, %v1863_v16  ;;  %v1959_v61 = vand.u32 4294901760, %v1862_v29  ;;  %v5373_v62 = vsub.f32 %v1849_v41, %v2626_v6  ;;  %v6444_v41 = vld [vmem:[#allocation23_spill] sm:$0xff] }
 0x41d   :  { %v1876_v63 = vsel %vm191_vm14, %v1867_v36, %v1869_v7  ;;  %3680 = vmatpush1.bf16.msra.mxu1 %v5301_v19  ;;  %v1859_v12 = vsel %vm174_vm4, %v1853_v51, %v1855_v32  ;;  %v2047_v60 = vand.u32 4294901760, %v2046_v52  ;;  %v6450_v19 = vand.u32 4294901760, %v5364_v11 }
 0x41e   :  { %v1879_v55 = vmul.f32 %v6435_v15, %v1876_v63  ;;  %v1858_v15 = vsel %vm174_vm4, %v1855_v32, %v1857_v0  ;;  %v1864_v47 = vmul.f32 %v6439_v30, %v1859_v12  ;;  %v5393_v57 = vsub.f32 %v1862_v29, %v1959_v61 }
 0x420   :  { %v1885_v42 = vpop.permute.xlu0 %1884  ;;  %v1873_v25 = vpop.permute.xlu1 %1872  ;;  %v1961_v21 = vand.u32 4294901760, %v1879_v55  ;;  %v2632_v30 = vand.u32 4294901760, %v1864_v47 }
 0x421   :  { %v1877_v63 = vsel %vm191_vm14, %v1873_v25, %v1867_v36  ;;  %v6438_v36 = vld [vmem:[#allocation20_spill] sm:$0xff] }
 0x422   :  { %v1878_v50 = vmul.f32 %v6436_v34, %v1877_v63  ;;  %v5366_v0 = vpack.c.bf16 %v1961_v21, %v1957_v3  ;;  %v1865_v51 = vmul.f32 %v6438_v36, %v1858_v15  ;;  %v2059_v15 = vand.u32 4294901760, %v2058_v9 }
 0x423   :  { %v6441_v36 = vand.u32 4294901760, %v5325_v28  ;;  %v5419_v31 = vsub.f32 %v1879_v55, %v1961_v21 }
 0x424   :  { %6437 = vst [vmem:[#allocation28_spill] sm:$0xff] %v5366_v0  ;;  %v1963_v32 = vand.u32 4294901760, %v1878_v50  ;;  %v1883_v63 = vpop.permute.xlu0 %1882  ;;  %v1871_v34 = vpop.permute.xlu1 %1870  ;;  %3586 = vmatprep.subr.bf16.mxu0 %v5366_v0  ;;  %v6455_v0 = vld [vmem:[#allocation24_spill] sm:$0xff] }
 0x425   :  { %v1892_v8 = vsel %vm208_vm8, %v1883_v63, %v1885_v42  ;;  %v1874_v18 = vsel %vm191_vm14, %v1871_v34, %v1873_v25  ;;  %v1875_v52 = vsel %vm191_vm14, %v1869_v7, %v1871_v34  ;;  %v5390_v12 = vsub.f32 %v5325_v28, %v6441_v36  ;;  %v6443_v25 = vld [vmem:[#allocation17_spill] sm:$0xff] }
 0x426   :  { %v5385_v6 = vpack.c.bf16 %v1963_v32, %v1959_v61  ;;  %v1880_v58 = vmul.f32 %v6442_v35, %v1875_v52  ;;  %v5397_v39 = vmul.f32 %v6443_v25, %v1874_v18  ;;  %v5399_v7 = vsub.f32 %v1863_v16, %v1957_v3  ;;  %v6446_v18 = vld [vmem:[#allocation21_spill] sm:$0xff]  ;;  %v6454_v25 = vld [vmem:[#allocation22_spill] sm:$0xff] }
 0x427   :  { %v2630_v34 = vand.u32 4294901760, %v1865_v51  ;;  %v1894_v37 = vmul.f32 %v6444_v41, %v1892_v8  ;;  %v6445_v16 = vand.u32 4294901760, %v5356_v27  ;;  %v5415_v52 = vpack.c.bf16 %v2059_v15, %v2047_v60 }
 0x428   :  { %6440 = vst [vmem:[#allocation67_spill] sm:$0xff] %v5385_v6  ;;  %v5402_v9 = vpop.permute.xlu0 %1900  ;;  %3588 = vmatpush1.bf16.msra.mxu0 %v5385_v6  ;;  %v1887_v36 = vpop.permute.xlu1 %1886  ;;  %v2636_v29 = vand.u32 4294901760, %v1880_v58  ;;  %v2726_v41 = vand.u32 4294901760, %v5371_v20  ;;  %v6448_v6 = vand.u32 4294901760, %v5397_v39 }
 0x429   :  { %v1891_v35 = vsel %vm208_vm8, %v1885_v42, %v1887_v36  ;;  %v2064_v3 = vsub.f32 %v5356_v27, %v6445_v16  ;;  %v2737_v16 = vsub.f32 %v5364_v11, %v6450_v19  ;;  %v1971_v60 = vand.u32 4294901760, %v1894_v37 }
 0x42a   :  { %v5413_v8 = vmul.f32 %v6446_v18, %v1891_v35  ;;  %v5421_v61 = vpack.c.bf16 %v2636_v29, %v2632_v30  ;;  %v5425_v42 = vpack.c.bf16 %v6448_v6, %v2630_v34  ;;  %v5430_v35 = vsub.f32 %v1878_v50, %v1963_v32 }
 0x42b   :  { %v6452_v19 = vand.u32 4294901760, %v5373_v62  ;;  %v5444_v32 = vsub.f32 %v1864_v47, %v2632_v30  ;;  %v5482_v30 = vsub.f32 %v1880_v58, %v2636_v29  ;;  %v6471_v58 = vand.u32 4294901760, %v5419_v31 }
 0x42c   :  { %6447 = vst [vmem:[#allocation33_spill] sm:$0xff] %v5421_v61  ;;  %6449 = vst [vmem:[#allocation34_spill] sm:$0xff] %v5425_v42  ;;  %v1969_v15 = vand.u32 4294901760, %v5413_v8  ;;  %v5433_v20 = vpop.permute.xlu0 %1916  ;;  %v1889_v18 = vpop.permute.xlu1 %1888  ;;  %3682 = vmatprep.subr.bf16.mxu1 %v5425_v42  ;;  %v6456_v42 = vand.u32 4294901760, %v5393_v57  ;;  %v2720_v29 = vand.u32 4294901760, %v5390_v12 }
 0x42d   :  { %6451 = vst [vmem:[#allocation36_spill] sm:$0xff] %v5430_v35  ;;  %v1890_v55 = vsel %vm208_vm8, %v1887_v36, %v1889_v18  ;;  %v1893_v21 = vsel %vm208_vm8, %v1889_v18, %v1883_v63  ;;  %v2731_v50 = vsub.f32 %v5373_v62, %v6452_v19  ;;  %6453 = vst [vmem:[#allocation54_spill] sm:$0xff] %v5444_v32  ;;  %3684 = vmatpush1.bf16.msra.mxu1 %v5421_v61 }
 0x42e   :  { %v5447_v1 = vmul.f32 %v6454_v25, %v1890_v55  ;;  %v5450_v49 = vmul.f32 %v6455_v0, %v1893_v21  ;;  %v2065_v36 = vand.u32 4294901760, %v2064_v3  ;;  %v5456_v63 = vsub.f32 %v5393_v57, %v6456_v42  ;;  %6464 = vst [vmem:[#allocation57_spill] sm:$0xff] %v5482_v30 }
 0x42f   :  { %v5458_v18 = vsub.f32 %v1865_v51, %v2630_v34  ;;  %v6458_v19 = vand.u32 4294901760, %v5145_v10  ;;  %v6460_v0 = vand.u32 4294901760, %v5139_v22  ;;  %v6462_v51 = vand.u32 4294901760, %v5399_v7 }
 0x430   :  { %v6106_v21 = vand.u32 4294901760, %v5447_v1  ;;  %v1899_v42 = vpop.permute.xlu0 %1898  ;;  %v1903_v6 = vpop.permute.xlu1 %1902  ;;  %v2738_v22 = vand.u32 4294901760, %v2737_v16  ;;  %v5480_v25 = vsub.f32 %v1894_v37, %v1971_v60  ;;  %v6465_v3 = vand.u32 4294901760, %v5153_v33 }
 0x431   :  { %6457 = vst [vmem:[#allocation43_spill] sm:$0xff] %v5458_v18  ;;  %v5462_v47 = vpack.c.bf16 %v1969_v15, %v6458_v19  ;;  %v5468_v55 = vpack.c.bf16 %v1971_v60, %v6460_v0  ;;  %v1907_v10 = vsel %vm225_vm13, %v5402_v9, %v1903_v6  ;;  %v2070_v34 = vsub.f32 %v5399_v7, %v6462_v51 }
 0x432   :  { %v2732_v19 = vand.u32 4294901760, %v2731_v50  ;;  %6463 = vst [vmem:[#allocation58_spill] sm:$0xff] %v5480_v25  ;;  %v5488_v61 = vpack.c.bf16 %v6106_v21, %v6465_v3  ;;  %v6468_v51 = vand.u32 4294901760, %v5450_v49  ;;  %v6470_v16 = vand.u32 4294901760, %v5323_v24  ;;  %v6473_v21 = vld [vmem:[#allocation25_spill] sm:$0xff] }
 0x433   :  { %6459 = vst [vmem:[#allocation45_spill] sm:$0xff] %v5462_v47  ;;  %6461 = vst [vmem:[#allocation38_spill] sm:$0xff] %v5468_v55  ;;  %3590 = vmatprep.subr.bf16.mxu0 %v5462_v47  ;;  %v6467_v47 = vand.u32 4294901760, %v5147_v44  ;;  %v2082_v33 = vsub.f32 %v5419_v31, %v6471_v58  ;;  %v6472_v60 = vand.u32 4294901760, %v5430_v35  ;;  %v5509_v44 = vmul.f32 %v6473_v21, %v1907_v10 }
 0x434   :  { %6466 = vst [vmem:[#allocation61_spill] sm:$0xff] %v5488_v61  ;;  %3592 = vmatpush1.bf16.msra.mxu0 %v5468_v55  ;;  %v5499_v37 = vpack.c.bf16 %v2065_v36, %v6470_v16  ;;  %v1905_v0 = vpop.permute.xlu0 %1904  ;;  %v1908_v36 = vsel %vm225_vm13, %v1899_v42, %v5402_v9  ;;  %v2071_v16 = vand.u32 4294901760, %v2070_v34  ;;  %v5520_v58 = vpack.c.bf16 %v2738_v22, %v2726_v41  ;;  %v6478_v34 = vld [vmem:[#allocation30_spill] sm:$0xff]  ;;  %v6479_v55 = vld [vmem:[#allocation32_spill] sm:$0xff] }
 0x435   :  { %v5495_v50 = vpack.c.bf16 %v6468_v51, %v6467_v47  ;;  %v2088_v3 = vsub.f32 %v5430_v35, %v6472_v60  ;;  %v1919_v47 = vpop.permute.xlu1 %1918  ;;  %v2077_v51 = vand.u32 4294901760, %v5456_v63  ;;  %v6474_v21 = vand.u32 4294901760, %v5444_v32 }
 0x436   :  { %v1923_v12 = vsel %vm242_vm12, %v5433_v20, %v1919_v47  ;;  %v5530_v9 = vpack.c.bf16 %v2732_v19, %v2720_v29  ;;  %v6475_v24 = vand.u32 4294901760, %v5397_v39  ;;  %v5538_v41 = vsub.f32 %v5413_v8, %v1969_v15 }
 0x437   :  { %6469 = vst [vmem:[#allocation59_spill] sm:$0xff] %v5495_v50  ;;  %3686 = vmatprep.subr.bf16.mxu1 %v5495_v50  ;;  %v5525_v10 = vsub.f32 %v5444_v32, %v6474_v21  ;;  %v1927_v22 = vmul.f32 %v6478_v34, %v1923_v12  ;;  %v2083_v21 = vand.u32 4294901760, %v2082_v33  ;;  %v1910_v14 = vmul.f32 %v6479_v55, %v1908_v36  ;;  %v6483_v12 = vld [vmem:[#allocation31_spill] sm:$0xff]  ;;  %v6491_v34 = vld [vmem:[#allocation40_spill] sm:$0xff] }
 0x438   :  { %3688 = vmatpush1.bf16.msra.mxu1 %v5488_v61  ;;  %v5535_v50 = vsub.f32 %v5397_v39, %v6475_v24  ;;  %6477 = vst [vmem:[#allocation63_spill] sm:$0xff] %v5538_v41  ;;  %v1973_v63 = vand.u32 4294901760, %v5509_v44  ;;  %v1933_v60 = vpop.permute.xlu0 %1932  ;;  %v2089_v61 = vand.u32 4294901760, %v2088_v3  ;;  %v6480_v19 = vand.u32 4294901760, %v5458_v18 }
 0x439   :  { %v1915_v59 = vpop.permute.xlu1 %1914  ;;  %v1906_v39 = vsel %vm225_vm13, %v1903_v6, %v1905_v0  ;;  %v1909_v8 = vsel %vm225_vm13, %v1905_v0, %v1899_v42  ;;  %v1977_v15 = vand.u32 4294901760, %v1927_v22  ;;  %v6481_v33 = vand.u32 4294901760, %v5480_v25 }
 0x43a   :  { %6476 = vst [vmem:[#allocation65_spill] sm:$0xff] %v5535_v50  ;;  %v5546_v29 = vsub.f32 %v5458_v18, %v6480_v19  ;;  %v1924_v55 = vsel %vm242_vm12, %v1915_v59, %v5433_v20  ;;  %v6482_v24 = vand.u32 4294901760, %v5482_v30  ;;  %v5569_v0 = vpack.c.bf16 %v2083_v21, %v2071_v16 }
 0x43b   :  { %v5558_v3 = vsub.f32 %v5480_v25, %v6481_v33  ;;  %v1926_v6 = vmul.f32 %v6483_v12, %v1924_v55  ;;  %v5567_v42 = vpack.c.bf16 %v1977_v15, %v1973_v63  ;;  %v1975_v17 = vand.u32 4294901760, %v1910_v14  ;;  %v6485_v33 = vld [vmem:[#allocation44_spill] sm:$0xff]  ;;  %v6486_v25 = vld [vmem:[#allocation46_spill] sm:$0xff] }
 0x43c   :  { %v5563_v36 = vsub.f32 %v5482_v30, %v6482_v24  ;;  %v5574_v40 = vmul.f32 %v6485_v33, %v1906_v39  ;;  %v1913_v2 = vmul.f32 %v6486_v25, %v1909_v8  ;;  %v1931_v30 = vpop.permute.xlu0 %1930  ;;  %v5582_v21 = vpack.c.bf16 %v2089_v61, %v2077_v51  ;;  %v6490_v61 = vld [vmem:[#allocation39_spill] sm:$0xff] }
 0x43d   :  { %6484 = vst [vmem:[#allocation68_spill] sm:$0xff] %v5567_v42  ;;  %v1979_v24 = vand.u32 4294901760, %v1926_v6  ;;  %v1921_v32 = vpop.permute.xlu1 %1920  ;;  %3594 = vmatprep.subr.bf16.mxu0 %v5567_v42  ;;  %v6487_v39 = vand.u32 4294901760, %v5450_v49  ;;  %v6488_v25 = vand.u32 4294901760, %v5447_v1  ;;  %v6493_v42 = vand.u32 4294901760, %v5535_v50 }
 0x43e   :  { %v1922_v55 = vsel %vm242_vm12, %v1919_v47, %v1921_v32  ;;  %v1925_v16 = vsel %vm242_vm12, %v1921_v32, %v1915_v59  ;;  %v1940_v59 = vsel %vm259_vm0, %v1931_v30, %v1933_v60  ;;  %v5599_v32 = vsub.f32 %v1927_v22, %v1977_v15  ;;  %v6494_v15 = vld [vmem:[#allocation52_spill] sm:$0xff] }
 0x43f   :  { %v5588_v33 = vsub.f32 %v5450_v49, %v6487_v39  ;;  %v5593_v8 = vsub.f32 %v5447_v1, %v6488_v25  ;;  %v5595_v47 = vpack.c.bf16 %v1979_v24, %v1975_v17  ;;  %v1928_v51 = vmul.f32 %v6490_v61, %v1922_v55 }
 0x440   :  { %v1929_v12 = vmul.f32 %v6491_v34, %v1925_v16  ;;  %v2646_v49 = vand.u32 4294901760, %v1913_v2  ;;  %v2648_v39 = vand.u32 4294901760, %v5574_v40  ;;  %v6492_v1 = vand.u32 4294901760, %v5538_v41 }
 0x441   :  { %6489 = vst [vmem:[#allocation66_spill] sm:$0xff] %v5595_v47  ;;  %v1935_v20 = vpop.permute.xlu1 %1934  ;;  %3596 = vmatpush1.bf16.msra.mxu0 %v5595_v47  ;;  %v2755_v22 = vsub.f32 %v5535_v50, %v6493_v42  ;;  %v1942_v55 = vmul.f32 %v6494_v15, %v1940_v59  ;;  %v2652_v34 = vand.u32 4294901760, %v1928_v51  ;;  %v5617_v23 = vsub.f32 %v5509_v44, %v1973_v63  ;;  %v6495_v47 = vld [vmem:[#allocation49_spill] sm:$0xff] }
 0x442   :  { %v2106_v25 = vsub.f32 %v5538_v41, %v6492_v1  ;;  %v2650_v61 = vand.u32 4294901760, %v1929_v12  ;;  %v1939_v16 = vsel %vm259_vm0, %v1933_v60, %v1935_v20  ;;  %v5621_v41 = vsub.f32 %v1926_v6, %v1979_v24 }
 0x443   :  { %v1943_v18 = vmul.f32 %v6495_v47, %v1939_v16  ;;  %v5623_v35 = vpack.c.bf16 %v2652_v34, %v2648_v39  ;;  %v5628_v15 = vsub.f32 %v1910_v14, %v1975_v17  ;;  %v5634_v50 = vand.u32 4294901760, %v1942_v55  ;;  %v6499_v14 = vld [vmem:[#allocation51_spill] sm:$0xff] }
 0x444   :  { %v5625_v42 = vpack.c.bf16 %v2650_v61, %v2646_v49  ;;  %v5630_v60 = vsub.f32 %v1929_v12, %v2650_v61  ;;  %v2107_v63 = vand.u32 4294901760, %v2106_v25  ;;  %v2756_v47 = vand.u32 4294901760, %v2755_v22  ;;  %v6500_v12 = vld [vmem:[#allocation53_spill] sm:$0xff] }
 0x445   :  { %6496 = vst [vmem:[#allocation37_spill] sm:$0xff] %v5623_v35  ;;  %v5632_v19 = vand.u32 4294901760, %v1943_v18  ;;  %v1937_v44 = vpop.permute.xlu1 %1936  ;;  %v5641_v16 = vsub.f32 %v1913_v2, %v2646_v49  ;;  %v6153_v25 = vand.u32 4294901760, %v5617_v23  ;;  %v6144_v1 = vand.u32 4294901760, %v5621_v41 }
 0x446   :  { %6497 = vst [vmem:[#allocation47_spill] sm:$0xff] %v5625_v42  ;;  %3690 = vmatprep.subr.bf16.mxu1 %v5625_v42  ;;  %v1938_v6 = vsel %vm259_vm0, %v1935_v20, %v1937_v44  ;;  %v1941_v24 = vsel %vm259_vm0, %v1937_v44, %v1931_v30  ;;  %v5649_v59 = vsub.f32 %v1928_v51, %v2652_v34  ;;  %v6501_v4 = vand.u32 4294901760, %v5599_v32 }
 0x447   :  { %6498 = vst [vmem:[#allocation70_spill] sm:$0xff] %v5632_v19  ;;  %v1944_v17 = vmul.f32 %v6499_v14, %v1938_v6  ;;  %v1945_v61 = vmul.f32 %v6500_v12, %v1941_v24  ;;  %3692 = vmatpush1.bf16.msra.mxu1 %v5623_v35  ;;  %1982 = vmatprep.subr.mxu0 %v5632_v19  ;;  %v6502_v30 = vand.u32 4294901760, %v5588_v33  ;;  %v6143_v51 = vand.u32 4294901760, %v5630_v60 }
 0x448   :  { %1984 = vmatpush1.msra.mxu0 %v5634_v50  ;;  %v2130_v2 = vsub.f32 %v5599_v32, %v6501_v4  ;;  %v5659_v49 = vsub.f32 %v1943_v18, %v5632_v19  ;;  %v6503_v34 = vand.u32 4294901760, %v5593_v8  ;;  %v6152_v24 = vand.u32 4294901760, %v5628_v15 }
 0x449   :  { %v2779_v20 = vsub.f32 %v5588_v33, %v6502_v30  ;;  %v5661_v22 = vand.u32 4294901760, %v1945_v61  ;;  %v5663_v44 = vand.u32 4294901760, %v1944_v17  ;;  %3598 = vmatprep.subr.bf16.mxu0 %v5415_v52  ;;  %2037 = vmatmul.mubr.f32.vlgmr.msra.gmra.mrb[4].mxu0 %v5347_v13  ;;  %v5673_v14 = vsub.f32 %v5574_v40, %v2648_v39 }
 0x44a   :  { %v2785_v6 = vsub.f32 %v5593_v8, %v6503_v34  ;;  %3600 = vmatpush1.bf16.msra.mxu0 %v5499_v37  ;;  %v2762_v18 = vand.u32 4294901760, %v5563_v36  ;;  %2197 = vmatprep.mubr.f32.mxu0 %v6242_v46  ;;  %v5679_v52 = vsub.f32 %v1942_v55, %v5634_v50  ;;  %v6504_v12 = vand.u32 4294901760, %v5292_v56 }
 0x44b   :  { %3602 = vmatprep.subr.bf16.mxu0 %v5569_v0  ;;  %2655 = vmatprep.subr.mxu1 %v5661_v22  ;;  %v2118_v40 = vsub.f32 %v5617_v23, %v6153_v25  ;;  %v6151_v37 = vand.u32 4294901760, %v5641_v16  ;;  %v2136_v36 = vsub.f32 %v5621_v41, %v6144_v1  ;;  %v6148_v39 = vand.u32 4294901760, %v5649_v59 }
 0x44c   :  { %v3605_v4 = vpack.c.bf16 %v2107_v63, %v6504_v12  ;;  %2657 = vmatpush1.msra.mxu1 %v5663_v44  ;;  %v6505_v0 = vand.u32 4294901760, %v5546_v29  ;;  %v2780_v30 = vand.u32 4294901760, %v2779_v20  ;;  %v5697_v56 = vsub.f32 %v1945_v61, %v5661_v22 }
 0x44d   :  { %3694 = vmatprep.subr.bf16.mxu1 %v5530_v9  ;;  %2710 = vmatmul.mubr.f32.vlgmr.msra.gmra.mrb[4].mxu1 %v5347_v13  ;;  %v2131_v63 = vand.u32 4294901760, %v2130_v2  ;;  %v6150_v34 = vand.u32 4294901760, %v5659_v49  ;;  %v2803_v12 = vsub.f32 %v5630_v60, %v6143_v51  ;;  %v2124_v29 = vsub.f32 %v5628_v15, %v6152_v24 }
 0x44e   :  { %v3697_v55 = vpack.c.bf16 %v2756_v47, %v6505_v0  ;;  %v6149_v47 = vand.u32 4294901760, %v5673_v14  ;;  %3604 = vmatpush1.bf16.msra.mxu0 %v5582_v21  ;;  %3696 = vmatpush1.bf16.msra.mxu1 %v5520_v58  ;;  %v6506_v9 = vand.u32 4294901760, %v5297_v43  ;;  %v6507_v13 = vand.u32 4294901760, %v5558_v3 }
 0x44f   :  { %v6508_v2 = vand.u32 4294901760, %v5525_v10  ;;  %v6147_v0 = vand.u32 4294901760, %v5679_v52  ;;  %3606 = vmatprep.subr.bf16.mxu0 %v3605_v4  ;;  %v2119_v51 = vand.u32 4294901760, %v2118_v40  ;;  %v2786_v1 = vand.u32 4294901760, %v2785_v6  ;;  %2870 = vmatprep.mubr.f32.mxu1 %v6242_v46 }
 0x450   :  { %v3607_v61 = vpack.c.bf16 %v6507_v13, %v6506_v9  ;;  %3698 = vmatprep.subr.bf16.mxu1 %v3697_v55  ;;  %v2791_v21 = vsub.f32 %v5641_v16, %v6151_v37  ;;  %v2809_v43 = vsub.f32 %v5649_v59, %v6148_v39  ;;  %v5725_v58 = vsub.f32 %v1944_v17, %v5663_v44 }
 0x451   :  { %v3699_v20 = vpack.c.bf16 %v2762_v18, %v6508_v2  ;;  %v6509_v10 = vand.u32 4294901760, %v5308_v5  ;;  %v2137_v18 = vand.u32 4294901760, %v2136_v36  ;;  %v3609_v4 = vpack.c.bf16 %v2131_v63, %v2119_v51 }
 0x452   :  { %v2142_v6 = vsub.f32 %v5659_v49, %v6150_v34  ;;  %v2804_v40 = vand.u32 4294901760, %v2803_v12  ;;  %v6146_v55 = vand.u32 4294901760, %v5697_v56  ;;  %v2797_v9 = vsub.f32 %v5673_v14, %v6149_v47  ;;  %3608 = vmatpush1.bf16.msra.mxu0 %v3607_v61 }
 0x453   :  { %v3701_v3 = vpack.c.bf16 %v2780_v30, %v6509_v10  ;;  %3700 = vmatpush1.bf16.msra.mxu1 %v3699_v20  ;;  %v2125_v17 = vand.u32 4294901760, %v2124_v29  ;;  %3610 = vmatprep.subr.bf16.mxu0 %v3609_v4  ;;  %v6510_v5 = vand.u32 4294901760, %v5318_v53  ;;  %v2792_v51 = vand.u32 4294901760, %v2791_v21 }
 0x454   :  { %v6145_v30 = vand.u32 4294901760, %v5725_v58  ;;  %v2148_v12 = vsub.f32 %v5679_v52, %v6147_v0  ;;  %v2810_v13 = vand.u32 4294901760, %v2809_v43  ;;  %v2143_v2 = vand.u32 4294901760, %v2142_v6  ;;  %v6535_v0 = vld [vmem:[#allocation61_spill] sm:$0xff] }
 0x455   :  { %3702 = vmatprep.subr.bf16.mxu1 %v3701_v3  ;;  %v3703_v36 = vpack.c.bf16 %v2786_v1, %v6510_v5  ;;  %v3611_v63 = vpack.c.bf16 %v2137_v18, %v2125_v17  ;;  %v3705_v10 = vpack.c.bf16 %v2804_v40, %v2792_v51  ;;  %v2815_v29 = vsub.f32 %v5697_v56, %v6146_v55  ;;  %v6512_v5 = vld [vmem:[#allocation43_spill] sm:$0xff]  ;;  %v6534_v55 = vld [vmem:[#allocation68_spill] sm:$0xff] }
 0x456   :  { %v2798_v61 = vand.u32 4294901760, %v2797_v9  ;;  %v2149_v53 = vand.u32 4294901760, %v2148_v12  ;;  %v2821_v20 = vsub.f32 %v5725_v58, %v6145_v30  ;;  %v3613_v21 = vpack.c.bf16 %v5299_v26, %v5280_v48  ;;  %v6511_v9 = vld [vmem:[#allocation36_spill] sm:$0xff]  ;;  %v6515_v12 = vld [vmem:[#allocation63_spill] sm:$0xff] }
 0x457   :  { %3612 = vmatpush1.bf16.msra.mxu0 %v3611_v63  ;;  %3704 = vmatpush1.bf16.msra.mxu1 %v3703_v36  ;;  %v2816_v43 = vand.u32 4294901760, %v2815_v29  ;;  %v3615_v3 = vpack.c.bf16 %v5356_v27, %v5264_v38  ;;  %v3617_v18 = vpack.c.bf16 %v5419_v31, %v5399_v7  ;;  %v3709_v6 = vpack.c.bf16 %v5373_v62, %v5325_v28  ;;  %v6513_v36 = vld [vmem:[#allocation65_spill] sm:$0xff]  ;;  %v6514_v63 = vld [vmem:[#allocation56_spill] sm:$0xff]  ;;  %v6533_v30 = vld [vmem:[#allocation59_spill] sm:$0xff] }
 0x458   :  { %2144 = vmatprep.subr.mxu0 %v2143_v2  ;;  %3706 = vmatprep.subr.bf16.mxu1 %v3705_v10  ;;  %v3707_v1 = vpack.c.bf16 %v2810_v13, %v2798_v61  ;;  %v2822_v4 = vand.u32 4294901760, %v2821_v20  ;;  %v3711_v40 = vpack.c.bf16 %v5364_v11, %v5327_v45  ;;  %v3619_v17 = vpack.c.bf16 %v6511_v9, %v5393_v57  ;;  %v6516_v2 = vld [vmem:[#allocation54_spill] sm:$0xff]  ;;  %v6517_v10 = vld [vmem:[#allocation57_spill] sm:$0xff]  ;;  %v6520_v20 = vld [vmem:[#allocation55_spill] sm:$0xff] }
 0x459   :  { %v3713_v51 = vpack.c.bf16 %v6513_v36, %v6512_v5  ;;  %v3621_v13 = vpack.c.bf16 %v6515_v12, %v6514_v63  ;;  %v3715_v29 = vpack.c.bf16 %v6517_v10, %v6516_v2  ;;  %v6518_v61 = vld [vmem:[#allocation29_spill] sm:$0xff]  ;;  %v6537_v39 = vand.u32 4294901760, %v5280_v48 }
 0x45a   :  { %v6538_v47 = vand.u32 4294901760, %v5299_v26  ;;  %v6539_v37 = vand.u32 4294901760, %v5264_v38  ;;  %v6540_v24 = vand.u32 4294901760, %v5356_v27  ;;  %v6544_v26 = vand.u32 4294901760, %v5325_v28 }
 0x45b   :  { %2150 = vmatpush1.msra.mxu0 %v2149_v53  ;;  %3708 = vmatpush1.bf16.msra.mxu1 %v3707_v1  ;;  %v6519_v53 = vld [vmem:[#allocation58_spill] sm:$0xff]  ;;  %v6546_v38 = vand.u32 4294901760, %v5327_v45  ;;  %v6547_v27 = vand.u32 4294901760, %v5364_v11  ;;  %v6550_v28 = vand.u32 4294901760, %v6512_v5  ;;  %v6553_v45 = vand.u32 4294901760, %v6515_v12 }
 0x45c   :  { %3614 = vmatprep.subr.bf16.mxu0 %v3613_v21  ;;  %2817 = vmatprep.subr.mxu1 %v2816_v43  ;;  %v3623_v1 = vpack.c.bf16 %v6519_v53, %v6518_v61  ;;  %v3717_v21 = vpack.c.bf16 %v5588_v33, %v6520_v20  ;;  %v3625_v43 = vpack.c.bf16 %v5599_v32, %v5617_v23 }
 0x45d   :  { %2199 = vmatmul.mubr.f32.vlgmr.msra.gmra.mrb[4].mxu0 %v5225_v54  ;;  %v3645_v34 = vpack.c.bf16 %v6538_v47, %v6537_v39  ;;  %v3647_v25 = vpack.c.bf16 %v6540_v24, %v6539_v37  ;;  %v6545_v39 = vand.u32 4294901760, %v5373_v62  ;;  %v3743_v24 = vpack.c.bf16 %v6547_v27, %v6546_v38 }
 0x45e   :  { %3616 = vmatpush1.bf16.msra.mxu0 %v3615_v3  ;;  %2305 = vmatprep.mubr.f32.mxu0 %v6242_v46  ;;  %v6521_v3 = vld [vmem:[#allocation35_spill] sm:$0xff]  ;;  %v6551_v62 = vand.u32 4294901760, %v6513_v36  ;;  %v6558_v36 = vand.u32 4294901760, %v6520_v20  ;;  %v6565_v20 = vand.u32 4294901760, %v5621_v41 }
 0x45f   :  { %3618 = vmatprep.subr.bf16.mxu0 %v3617_v18  ;;  %2823 = vmatpush1.msra.mxu1 %v2822_v4  ;;  %v3719_v18 = vpack.c.bf16 %v5593_v8, %v6521_v3  ;;  %v3627_v4 = vpack.c.bf16 %v5621_v41, %v5628_v15  ;;  %v3741_v47 = vpack.c.bf16 %v6545_v39, %v6544_v26  ;;  %v6561_v26 = vand.u32 4294901760, %v5599_v32 }
 0x460   :  { %3710 = vmatprep.subr.bf16.mxu1 %v3709_v6  ;;  %2872 = vmatmul.mubr.f32.vlgmr.msra.gmra.mrb[4].mxu1 %v5225_v54  ;;  %v3721_v6 = vpack.c.bf16 %v5630_v60, %v5641_v16  ;;  %v6568_v32 = vand.u32 4294901760, %v5659_v49  ;;  %v6571_v41 = vand.u32 4294901760, %v5679_v52 }
 0x461   :  { %3712 = vmatpush1.bf16.msra.mxu1 %v3711_v40  ;;  %2978 = vmatprep.mubr.f32.mxu1 %v6242_v46  ;;  %v3723_v40 = vpack.c.bf16 %v5649_v59, %v5673_v14 }
 0x462   :  { %3620 = vmatpush1.bf16.msra.mxu0 %v3619_v17  ;;  %3714 = vmatprep.subr.bf16.mxu1 %v3713_v51  ;;  %v6522_v17 = vld [vmem:[#allocation19_spill] sm:$0xff]  ;;  %v6523_v51 = vld [vmem:[#allocation60_spill] sm:$0xff] }
 0x463   :  { %3622 = vmatprep.subr.bf16.mxu0 %v3621_v13  ;;  %v6524_v13 = vld [vmem:[#allocation64_spill] sm:$0xff] }
 0x465   :  { %3716 = vmatpush1.bf16.msra.mxu1 %v3715_v29  ;;  %v6525_v29 = vld [vmem:[#allocation28_spill] sm:$0xff] }
 0x466   :  { %3624 = vmatpush1.bf16.msra.mxu0 %v3623_v1  ;;  %3718 = vmatprep.subr.bf16.mxu1 %v3717_v21  ;;  %v6526_v1 = vld [vmem:[#allocation27_spill] sm:$0xff]  ;;  %v6527_v21 = vld [vmem:[#allocation26_spill] sm:$0xff] }
 0x467   :  { %3626 = vmatprep.subr.bf16.mxu0 %v3625_v43  ;;  %v6528_v43 = vld [vmem:[#allocation67_spill] sm:$0xff] }
 0x469   :  { %3720 = vmatpush1.bf16.msra.mxu1 %v3719_v18  ;;  %v6529_v18 = vld [vmem:[#allocation34_spill] sm:$0xff] }
 0x46a   :  { %3628 = vmatpush1.bf16.msra.mxu0 %v3627_v4  ;;  %3722 = vmatprep.subr.bf16.mxu1 %v3721_v6  ;;  %v6530_v4 = vld [vmem:[#allocation45_spill] sm:$0xff] }
 0x46b   :  { %2255 = vmatprep.subr.mxu0 %v5659_v49  ;;  %v6531_v6 = vld [vmem:[#allocation33_spill] sm:$0xff]  ;;  %v3873_v49 = vmov 4  }
 0x46c   :  { %3850 = vset.pattern.permute.xlu1 %v3873_v49 }
 0x46d   :  { %3724 = vmatpush1.bf16.msra.mxu1 %v3723_v40  ;;  %v6532_v40 = vld [vmem:[#allocation38_spill] sm:$0xff] }
 0x46e   :  { %2258 = vmatpush1.msra.mxu0 %v5679_v52  ;;  %2928 = vmatprep.subr.mxu1 %v5697_v56 }
 0x46f   :  { %3630 = vmatprep.subr.bf16.mxu0 %v6522_v17  ;;  %2308 = vmatmul.mubr.f32.vlgmr.msra.gmra.mrb[4].mxu0 %v6523_v51 }
 0x470   :  { %3632 = vmatpush1.bf16.msra.mxu0 %v6524_v13  ;;  %2396 = vmatprep.mubr.f32.mxu0 %v6242_v46 }
 0x471   :  { %3634 = vmatprep.subr.bf16.mxu0 %v6525_v29  ;;  %2931 = vmatpush1.msra.mxu1 %v5725_v58 }
 0x472   :  { %3726 = vmatprep.subr.bf16.mxu1 %v6526_v1  ;;  %2981 = vmatmul.mubr.f32.vlgmr.msra.gmra.mrb[4].mxu1 %v6523_v51  ;;  %v6536_v51 = vld [vmem:[#allocation66_spill] sm:$0xff] }
 0x473   :  { %3728 = vmatpush1.bf16.msra.mxu1 %v6527_v21  ;;  %3069 = vmatprep.mubr.f32.mxu1 %v6242_v46 }
 0x474   :  { %3636 = vmatpush1.bf16.msra.mxu0 %v6528_v43  ;;  %3730 = vmatprep.subr.bf16.mxu1 %v6529_v18 }
 0x475   :  { %3638 = vmatprep.subr.bf16.mxu0 %v6530_v4 }
 0x477   :  { %3732 = vmatpush1.bf16.msra.mxu1 %v6531_v6 }
 0x478   :  { %3640 = vmatpush1.bf16.msra.mxu0 %v6532_v40  ;;  %3734 = vmatprep.subr.bf16.mxu1 %v6533_v30 }
 0x479   :  { %3642 = vmatprep.subr.bf16.mxu0 %v6534_v55 }
 0x47b   :  { %3736 = vmatpush1.bf16.msra.mxu1 %v6535_v0 }
 0x47c   :  { %3644 = vmatpush1.bf16.msra.mxu0 %v6536_v51  ;;  %3738 = vmatprep.subr.bf16.mxu1 %v5625_v42  ;;  %v6541_v42 = vld [vmem:[#allocation62_spill] sm:$0xff] }
 0x47d   :  { %2347 = vmatprep.subr.mxu0 %v5632_v19  ;;  %v6542_v19 = vand.u32 4294901760, %v5399_v7  ;;  %v6549_v7 = vand.u32 4294901760, %v6511_v9  ;;  %v6557_v9 = vand.u32 4294901760, %v6519_v53  ;;  %v6564_v53 = vand.u32 4294901760, %v5628_v15 }
 0x47e   :  { %v6572_v15 = vand.u32 4294901760, %v5697_v56 }
 0x47f   :  { %3740 = vmatpush1.bf16.msra.mxu1 %v5623_v35  ;;  %v6543_v35 = vand.u32 4294901760, %v5419_v31  ;;  %v6548_v31 = vand.u32 4294901760, %v5393_v57  ;;  %v6554_v57 = vand.u32 4294901760, %v6516_v2  ;;  %v6562_v2 = vand.u32 4294901760, %v6521_v3 }
 0x480   :  { %2349 = vmatpush1.msra.mxu0 %v5634_v50  ;;  %3020 = vmatprep.subr.mxu1 %v5661_v22  ;;  %v6569_v3 = vand.u32 4294901760, %v5673_v14  ;;  %v1775_v14 = vpop.xlane.xlu0 %1774 }
 0x481   :  { %3646 = vmatprep.subr.bf16.mxu0 %v3645_v34  ;;  %2400 = vmatmul.mubr.f32.vlgmr.msra.gmra.mrb[4].mxu0 %v6541_v42  ;;  %v3649_v48 = vpack.c.bf16 %v6543_v35, %v6542_v19  ;;  %v3651_v35 = vpack.c.bf16 %v6549_v7, %v6548_v31  ;;  %v3745_v19 = vpack.c.bf16 %v6551_v62, %v6550_v28  ;;  %v6556_v34 = vand.u32 4294901760, %v6518_v61  ;;  %v3861_v31 = vld [vmem:[%s5938_s2] sm:$0xff] }
 0x482   :  { %3648 = vmatpush1.bf16.msra.mxu0 %v3647_v25  ;;  %2524 = vmatprep.mubr.f32.mxu0 %v6242_v46  ;;  %v6552_v25 = vand.u32 4294901760, %v6514_v63  ;;  %v6559_v63 = vand.u32 4294901760, %v5588_v33  ;;  %v3659_v33 = vpack.c.bf16 %v6565_v20, %v6564_v53  ;;  %v1776_v56 = vmul.f32 0.001953125, %v1775_v14  ;;  %v6577_v53 = vld [vmem:[#allocation41_spill] sm:$0xff] }
 0x483   :  { %3650 = vmatprep.subr.bf16.mxu0 %v3649_v48  ;;  %3022 = vmatpush1.msra.mxu1 %v5663_v44  ;;  %v3655_v5 = vpack.c.bf16 %v6557_v9, %v6556_v34  ;;  %v6560_v48 = vand.u32 4294901760, %v5617_v23  ;;  %v6567_v23 = vand.u32 4294901760, %v5630_v60  ;;  %v6574_v60 = vld [vmem:[#allocation47_spill] sm:$0xff]  ;;  %v3874_v28 = vmov 2  }
 0x484   :  { %3742 = vmatprep.subr.bf16.mxu1 %v3741_v47  ;;  %3073 = vmatmul.mubr.f32.vlgmr.msra.gmra.mrb[4].mxu1 %v6541_v42  ;;  %v3653_v11 = vpack.c.bf16 %v6553_v45, %v6552_v25  ;;  %v6555_v42 = vand.u32 4294901760, %v6517_v10  ;;  %v3749_v12 = vpack.c.bf16 %v6559_v63, %v6558_v36  ;;  %v6563_v10 = vand.u32 4294901760, %v5593_v8  ;;  %v1785_v52 = vpop.xlane.xlu0 %1784 }
 0x485   :  { %3744 = vmatpush1.bf16.msra.mxu1 %v3743_v24  ;;  %3197 = vmatprep.mubr.f32.mxu1 %v6242_v46  ;;  %v3657_v39 = vpack.c.bf16 %v6561_v26, %v6560_v48  ;;  %v6566_v47 = vand.u32 4294901760, %v5641_v16  ;;  %v6570_v8 = vand.u32 4294901760, %v5649_v59  ;;  %v6573_v59 = vand.u32 4294901760, %v5725_v58  ;;  %v6576_v16 = vld [vmem:[#allocation37_spill] sm:$0xff] }
 0x486   :  { %3652 = vmatpush1.bf16.msra.mxu0 %v3651_v35  ;;  %3746 = vmatprep.subr.bf16.mxu1 %v3745_v19  ;;  %v3747_v37 = vpack.c.bf16 %v6555_v42, %v6554_v57  ;;  %v3751_v61 = vpack.c.bf16 %v6563_v10, %v6562_v2  ;;  %v1787_v58 = vmul.f32 %v1776_v56, %v1776_v56  ;;  %v3875_v62 = vmov 5  }
 0x487   :  { %3654 = vmatprep.subr.bf16.mxu0 %v3653_v11  ;;  %v3753_v38 = vpack.c.bf16 %v6567_v23, %v6566_v47  ;;  %v3755_v27 = vpack.c.bf16 %v6570_v8, %v6569_v3  ;;  %3852 = vset.pattern.permute.xlu0 %v3875_v62  ;;  %v3876_v48 = vmov 3   ;;  %v6579_v23 = vld [vmem:[#allocation48_spill] sm:$0xff] }
 0x489   :  { %3748 = vmatpush1.bf16.msra.mxu1 %v3747_v37 }
 0x48a   :  { %3656 = vmatpush1.bf16.msra.mxu0 %v3655_v5  ;;  %3750 = vmatprep.subr.bf16.mxu1 %v3749_v12 }
 0x48b   :  { %3658 = vmatprep.subr.bf16.mxu0 %v3657_v39 }
 0x48d   :  { %3752 = vmatpush1.bf16.msra.mxu1 %v3751_v61 }
 0x48e   :  { %3660 = vmatpush1.bf16.msra.mxu0 %v3659_v33  ;;  %3754 = vmatprep.subr.bf16.mxu1 %v3753_v38  ;;  %v6578_v33 = vld [vmem:[#allocation50_spill] sm:$0xff] }
 0x48f   :  { %2473 = vmatprep.subr.mxu0 %v6568_v32  ;;  %v6580_v32 = vld [vmem:[#allocation42_spill] sm:$0xff] }
 0x491   :  { %3756 = vmatpush1.bf16.msra.mxu1 %v3755_v27 }
 0x492   :  { %2477 = vmatpush1.msra.mxu0 %v6571_v41  ;;  %3146 = vmatprep.subr.mxu1 %v6572_v15 }
 0x493   :  { %3662 = vmatprep.subr.bf16.mxu0 %v6522_v17  ;;  %2526 = vmatmul.mubr.f32.vlgmr.msra.gmra.mrb[4].mxu0 %v5225_v54 }
 0x494   :  { %3664 = vmatpush1.bf16.msra.mxu0 %v6524_v13  ;;  %2614 = vmatprep.mubr.f32.mxu0 %v6242_v46 }
 0x495   :  { %3666 = vmatprep.subr.bf16.mxu0 %v6525_v29  ;;  %3150 = vmatpush1.msra.mxu1 %v6573_v59 }
 0x496   :  { %3758 = vmatprep.subr.bf16.mxu1 %v6526_v1  ;;  %3199 = vmatmul.mubr.f32.vlgmr.msra.gmra.mrb[4].mxu1 %v5225_v54 }
 0x497   :  { %3760 = vmatpush1.bf16.msra.mxu1 %v6527_v21  ;;  %3287 = vmatprep.mubr.f32.mxu1 %v6242_v46  ;;  %v6575_v46 = vld [vmem:[#allocation70_spill] sm:$0xff] }
 0x498   :  { %3668 = vmatpush1.bf16.msra.mxu0 %v6528_v43  ;;  %3762 = vmatprep.subr.bf16.mxu1 %v6529_v18 }
 0x499   :  { %3670 = vmatprep.subr.bf16.mxu0 %v6530_v4 }
 0x49b   :  { %3764 = vmatpush1.bf16.msra.mxu1 %v6531_v6 }
 0x49c   :  { %3672 = vmatpush1.bf16.msra.mxu0 %v6532_v40  ;;  %3766 = vmatprep.subr.bf16.mxu1 %v6533_v30 }
 0x49d   :  { %3674 = vmatprep.subr.bf16.mxu0 %v6534_v55 }
 0x49f   :  { %3768 = vmatpush1.bf16.msra.mxu1 %v6535_v0  ;;  %v1786_v0 = vmul.f32 0.001953125, %v1785_v52 }
 0x4a0   :  { %3676 = vmatpush1.bf16.msra.mxu0 %v6536_v51  ;;  %3770 = vmatprep.subr.bf16.mxu1 %v6574_v60 }
 0x4a1   :  { %2565 = vmatprep.subr.mxu0 %v6575_v46  ;;  %v1788_v55 = vsub.f32 %v1786_v0, %v1787_v58 }
 0x4a3   :  { %3772 = vmatpush1.bf16.msra.mxu1 %v6576_v16  ;;  %v1789_v30 = vmax.f32 %v1788_v55, 0.0 }
 0x4a4   :  { %2567 = vmatpush1.msra.mxu0 %v5634_v50  ;;  %3238 = vmatprep.subr.mxu1 %v5661_v22 }
 0x4a5   :  { %2616 = vmatmul.mubr.f32.vlgmr.msra.gmra.mrb[4].mxu0 %v5225_v54  ;;  %v1790_v29 = vadd.f32 1e-05, %v1789_v30 }
 0x4a7   :  { %3240 = vmatpush1.msra.mxu1 %v5663_v44  ;;  %3857 = vrsqrt.f32 %v1790_v29 }
 0x4a8   :  { %3289 = vmatmul.mubr.f32.vlgmr.msra.gmra.mrb[4].mxu1 %v5225_v54 }
 0x4b1   :  { %v3858_v24 = vpop.eup %3857 }
 0x4b2   :  { %v1792_v7 = vmul.f32 %v3861_v31, %v3858_v24 }
 0x4b4   :  { %v1802_v35 = vmul.f32 %v1792_v7, %v1776_v56 }
 0x578   :  { %v2617_v17 = vpop.f32.mrb[4].mxu0 }
 0x579   :  { %v3301_v13 = vmul.f32 %v2617_v17, %v2617_v17  ;;  %v2619_v50 = vpop.f32.mrb[5].mxu0 }
 0x57a   :  { %v3295_v22 = vadd.f32 %v2619_v50, %v2617_v17  ;;  %v3302_v1 = vmul.f32 %v2619_v50, %v2619_v50 }
 0x57b   :  { %v3290_v21 = vpop.f32.mrb[4].mxu1 }
 0x57c   :  { %v3305_v43 = vadd.f32 %v3302_v1, %v3301_v13  ;;  %v3303_v44 = vmul.f32 %v3290_v21, %v3290_v21  ;;  %v3292_v18 = vpop.f32.mrb[5].mxu1  ;;  %v3296_v54 = vadd.f32 %v3295_v22, %v3290_v21 }
 0x57d   :  { %v3304_v4 = vmul.f32 %v3292_v18, %v3292_v18 }
 0x57e   :  { %v3297_v6 = vadd.f32 %v3296_v54, %v3292_v18  ;;  %v3306_v40 = vadd.f32 %v3305_v43, %v3303_v44 }
 0x580   :  { %3298 = vadd.xlane.f32.xlu1 %v3297_v6  ;;  %v3307_v51 = vadd.f32 %v3306_v40, %v3304_v4 }
 0x582   :  { %3308 = vadd.xlane.f32.xlu0 %v3307_v51 }
 0x591   :  { %1804 = vrot.lane.b32.xlu1 %v1802_v35, %s3866_s23 }
 0x595   :  { %1795 = vperm.xlu1 %3850, %v1792_v7  }
 0x599   :  { %3851 = vset.pattern.permute.xlu1 %v3874_v28 }
 0x60d   :  { %v3299_v19 = vpop.xlane.xlu1 %3298 }
 0x60e   :  { %v3300_v25 = vmul.f32 0.001953125, %v3299_v19 }
 0x60f   :  { %v3309_v45 = vpop.xlane.xlu0 %3308 }
 0x610   :  { %v3311_v11 = vmul.f32 %v3300_v25, %v3300_v25  ;;  %v3310_v57 = vmul.f32 0.001953125, %v3309_v45 }
 0x611   :  { %v1805_v63 = vpop.permute.xlu1 %1804 }
 0x612   :  { %v3312_v42 = vsub.f32 %v3310_v57, %v3311_v11  ;;  %v1807_v12 = vsub.f32 %v3861_v31, %v1805_v63 }
 0x614   :  { %v3313_v37 = vmax.f32 %v3312_v42, 0.0 }
 0x615   :  { %v1796_v2 = vpop.permute.xlu1 %1795 }
 0x616   :  { %v3314_v34 = vadd.f32 1e-05, %v3313_v37  ;;  %v1798_v20 = vmul.f32 %v1796_v2, %v6577_v53  ;;  %v1799_v47 = vmul.f32 %v1796_v2, %v6578_v33  ;;  %v1800_v38 = vmul.f32 %v1796_v2, %v6579_v23 }
 0x617   :  { %v1801_v3 = vmul.f32 %v1796_v2, %v6580_v32 }
 0x618   :  { %3859 = vrsqrt.f32 %v3314_v34 }
 0x622   :  { %v3860_v9 = vpop.eup %3859 }
 0x623   :  { %v3316_v5 = vmul.f32 %v3861_v31, %v3860_v9 }
 0x625   :  { %3319 = vperm.xlu1 %3851, %v3316_v5   ;;  %v3326_v36 = vmul.f32 %v3316_v5, %v3300_v25 }
 0x627   :  { %3328 = vrot.lane.b32.xlu0 %v3326_v36, %s3866_s23 }
 0x629   :  { %3853 = vset.pattern.permute.xlu1 %v3876_v48 }
 0x62b   :  { %1810 = vperm.xlu0 %3852, %v1807_v12  }
 0x62f   :  { %3854 = vset.pattern.permute.xlu0 %v3876_v48 }
 0x699   :  { %v3329_v26 = vpop.permute.xlu0 %3328 }
 0x69a   :  { %v3331_v39 = vsub.f32 %v3861_v31, %v3329_v26 }
 0x69c   :  { %3334 = vperm.xlu1 %3853, %v3331_v39  }
 0x6a4   :  { %v3320_v10 = vpop.permute.xlu1 %3319 }
 0x6a5   :  { %v3322_v8 = vmul.f32 %v3320_v10, %v2617_v17  ;;  %v3323_v27 = vmul.f32 %v3320_v10, %v2619_v50  ;;  %v3324_v41 = vmul.f32 %v3320_v10, %v3290_v21  ;;  %v3325_v15 = vmul.f32 %v3320_v10, %v3292_v18 }
 0x6aa   :  { %v1811_v61 = vpop.permute.xlu0 %1810 }
 0x6ab   :  { %v1813_v59 = vadd.f32 %v1811_v61, %v1798_v20  ;;  %v1814_v60 = vadd.f32 %v1811_v61, %v1799_v47  ;;  %v1815_v46 = vadd.f32 %v1811_v61, %v1800_v38  ;;  %v1816_v16 = vadd.f32 %v1811_v61, %v1801_v3 }
 0x71b   :  { %v3335_v49 = vpop.permute.xlu1 %3334 }
 0x71c   :  { %v3337_v14 = vadd.f32 %v3335_v49, %v3322_v8  ;;  %v3338_v52 = vadd.f32 %v3335_v49, %v3323_v27  ;;  %v3339_v56 = vadd.f32 %v3335_v49, %v3324_v41  ;;  %v3340_v0 = vadd.f32 %v3335_v49, %v3325_v15 }
 0x71e   :  { %v3341_v58 = vadd.f32 %v3337_v14, %v1813_v59  ;;  %v3342_v55 = vadd.f32 %v3338_v52, %v1814_v60  ;;  %v3343_v30 = vadd.f32 %v3339_v56, %v1815_v46  ;;  %v3344_v13 = vadd.f32 %v3340_v0, %v1816_v16 }
 0x720   :  { %v3345_v29 = vmax.f32 %v3341_v58, 0.0  ;;  %v3346_v22 = vmax.f32 %v3342_v55, 0.0  ;;  %v3347_v1 = vmax.f32 %v3343_v30, 0.0  ;;  %v3348_v17 = vmax.f32 %v3344_v13, 0.0 }
 0x722   :  { %3349 = vst [vmem:[%s5939_s3] sm:$0xff] %v3345_v29  ;;  %3350 = vst [vmem:[%s5939_s3 + $0x8] sm:$0xff] %v3346_v22 }
 0x723   :  { %3351 = vst [vmem:[%s5939_s3 + $0x10] sm:$0xff] %v3347_v1  ;;  %3352 = vst [vmem:[%s5939_s3 + $0x18] sm:$0xff] %v3348_v17 }

</bundles_post_ra>
